<compile_context>
chip_gen: v7x
topology: tpu7x:2x2x1
jax: 0.10.0
libtpu: 0.0.40
codegen_flags: <defaults>
</compile_context>

<pallas_src>
import jax
import jax.numpy as jnp
from jax import lax
from jax.experimental import pallas as pl
from jax.experimental.pallas import tpu as pltpu


# Contract the last dim of both operands: x @ y.T without an explicit transpose.
_NT_DIMS = (((1,), (1,)), ((), ()))


def _epilogue(dot_f32, sidex, sidey, out_dtype):
    """Fused distance + Cauchy epilogue on a (tm, tn) f32 tile."""
    sq_x = sidex[:, 0:1]          # (tm, 1)  ||x||^2
    rsx = sidex[:, 1:2]           # (tm, 1)  sqrt(scale_x)
    sq_y = sidey[0:1, :]          # (1, tn)  ||y||^2
    rsy = sidey[1:2, :]           # (1, tn)  sqrt(scale_y)
    d = sq_x + sq_y - 2.0 * dot_f32
    s = rsx * rsy                 # == sqrt(scale_x * scale_y); sqrt hoisted to wrapper
    t = s + d
    # 1/(1 + d/s) == s/(s + d): approx EUP reciprocal + one Newton refinement.
    r = pl.reciprocal(t, approx=True)
    r = r * (2.0 - t * r)
    return (s * r).astype(out_dtype)


def _cauchy_kernel_single(x_ref, y_ref, sidex_ref, sidey_ref, o_ref):
    """Whole feature dim in one shot (2-D grid): pure MXU matmul + epilogue."""
    dot = lax.dot_general(x_ref[...], y_ref[...], _NT_DIMS,
                          preferred_element_type=jnp.float32)          # (tm, tn) f32
    o_ref[...] = _epilogue(dot, sidex_ref[...], sidey_ref[...], o_ref.dtype)


def _cauchy_kernel_reduce(x_ref, y_ref, sidex_ref, sidey_ref, o_ref, acc_ref):
    """K-tiled version (3-D grid): inner loop accumulates the dot product only."""
    k = pl.program_id(2)

    @pl.when(k == 0)
    def _():
        acc_ref[...] = jnp.zeros_like(acc_ref)

    acc_ref[...] += lax.dot_general(x_ref[...], y_ref[...], _NT_DIMS,
                                    preferred_element_type=jnp.float32)

    @pl.when(k == pl.num_programs(2) - 1)
    def _():
        o_ref[...] = _epilogue(acc_ref[...], sidex_ref[...], sidey_ref[...],
                               o_ref.dtype)


def _round_up(a, m):
    return ((a + m - 1) // m) * m


def _vmem_bytes_2d(r, c, itemsize):
    # Conservative (8,128)-padded VMEM footprint of one buffer.
    return _round_up(r, 8) * _round_up(c, 128) * itemsize


def batched_cauchy_forward(x, y, sample_x, sample_y, scale, fixed_scale=True,
                           tm=512, tn=1024, tk_max=1024, out_dtype=None,
                           mxu_dtype=None, split_small_grid=True):
    """Pallas implementation of BatchedCauchyKernel.forward.

    x: (N, D), y: (M, D), sample_x: (N, B), sample_y: (M, B), scale: (B,)
    -> (N, M) in `out_dtype` (default: x.dtype; bfloat16 halves output HBM traffic).
    """
    N, D = x.shape
    M, Dy = y.shape
    assert D == Dy, "feature dims must match"
    out_dtype = jnp.dtype(out_dtype if out_dtype is not None else x.dtype)
    f32 = jnp.float32

    # --- cheap plain-JAX glue (hoisted out of the kernel) ---------------------
    sq_x = jnp.sum(x.astype(f32) ** 2, axis=-1, keepdims=True)          # (N, 1)
    sq_y = jnp.sum(y.astype(f32) ** 2, axis=-1, keepdims=True)          # (M, 1)

    scale_vec = jnp.asarray(scale, dtype=f32).reshape(-1, 1)            # (B, 1)
    scale_x = sample_x.astype(f32) @ scale_vec                          # (N, 1)
    scale_y = sample_y.astype(f32) @ scale_vec                          # (M, 1)
    if not fixed_scale:
        # Matches the PyTorch module: softplus/clamp applied AFTER projection.
        scale_x = jnp.clip(jax.nn.softplus(scale_x), 1e-10, 1e4)
        scale_y = jnp.clip(jax.nn.softplus(scale_y), 1e-10, 1e4)

    # Pack the tiny side inputs: one (N,2) and one (2,M) array -> one small DMA
    # per side per grid step.  sqrt hoisted here (N+M sqrts vs N*M in-kernel).
    side_x = jnp.concatenate([sq_x, jnp.sqrt(scale_x)], axis=1)         # (N, 2)
    side_y = jnp.concatenate([sq_y, jnp.sqrt(scale_y)], axis=1).T       # (2, M)

    if mxu_dtype is not None:
        # Large-D compute-bound regime: bf16 operands, f32 accumulation.
        x = x.astype(mxu_dtype)
        y = y.astype(mxu_dtype)

    # --- tiling ---------------------------------------------------------------
    tm = min(tm, N)
    tn = min(tn, M)
    assert N % tm == 0 and M % tn == 0, \
        "N, M must be divisible by the chosen tile sizes (pad upstream if not)"

    # Keep both v7x TensorCores busy: make sure the parallel axes have >=2 blocks.
    if split_small_grid and (N // tm) * (M // tn) < 2:
        if N % 16 == 0 and tm > 8:
            tm = tm // 2
        elif M % 256 == 0 and tn > 128:
            tn = tn // 2

    in_itemsize = jnp.dtype(x.dtype).itemsize
    out_itemsize = out_dtype.itemsize

    if D <= tk_max:
        # Single-shot K: 2-D grid, no accumulator scratch, no pl.when branches.
        grid = (N // tm, M // tn)
        in_specs = [
            pl.BlockSpec((tm, D), lambda i, j: (i, 0)),   # x
            pl.BlockSpec((tn, D), lambda i, j: (j, 0)),   # y
            pl.BlockSpec((tm, 2), lambda i, j: (i, 0)),   # [||x||^2, sqrt(scale_x)]
            pl.BlockSpec((2, tn), lambda i, j: (0, j)),   # [||y||^2; sqrt(scale_y)]
        ]
        out_specs = pl.BlockSpec((tm, tn), lambda i, j: (i, j))
        scratch = []
        kernel = _cauchy_kernel_single
        dim_sem = ("parallel", "parallel")
        kdim = D
    else:
        tk = tk_max
        assert D % tk == 0 and tk % 128 == 0, \
            "D must be divisible by tk_max (a multiple of 128) for the K-tiled path"
        grid = (N // tm, M // tn, D // tk)
        in_specs = [
            pl.BlockSpec((tm, tk), lambda i, j, k: (i, k)),   # x
            pl.BlockSpec((tn, tk), lambda i, j, k: (j, k)),   # y
            pl.BlockSpec((tm, 2), lambda i, j, k: (i, 0)),    # packed side x
            pl.BlockSpec((2, tn), lambda i, j, k: (0, j)),    # packed side y
        ]
        out_specs = pl.BlockSpec((tm, tn), lambda i, j, k: (i, j))
        scratch = [pltpu.VMEM((tm, tn), jnp.float32)]
        kernel = _cauchy_kernel_reduce
        dim_sem = ("parallel", "parallel", "arbitrary")
        kdim = tk

    # Explicit VMEM budget (v7x: 64 MiB physical, 32 MiB scoped default).
    est = 2 * (_vmem_bytes_2d(tm, kdim, in_itemsize)      # x tile, double-buffered
               + _vmem_bytes_2d(tn, kdim, in_itemsize)    # y tile
               + _vmem_bytes_2d(tm, 2, 4)                 # side x
               + _vmem_bytes_2d(2, tn, 4)                 # side y
               + _vmem_bytes_2d(tm, tn, out_itemsize))    # output tile
    if scratch:
        est += _vmem_bytes_2d(tm, tn, 4)                  # accumulator
    assert est <= (56 << 20), \
        "tile footprint exceeds v7x VMEM headroom; reduce tm/tn/tk_max"
    vmem_limit = min(64 << 20, max(32 << 20, int(est * 1.4)))

    grid_spec = pltpu.PrefetchScalarGridSpec(
        num_scalar_prefetch=0,
        grid=grid,
        in_specs=in_specs,
        out_specs=out_specs,
        scratch_shapes=scratch,
    )

    return pl.pallas_call(
        kernel,
        out_shape=jax.ShapeDtypeStruct((N, M), out_dtype),
        grid_spec=grid_spec,
        compiler_params=pltpu.CompilerParams(
            dimension_semantics=dim_sem,
            vmem_limit_bytes=vmem_limit),
    )(x, y, side_x, side_y)


def _reference(x, y, sample_x, sample_y, scale, fixed_scale=True):
    sq_x = jnp.sum(x ** 2, axis=-1, keepdims=True)
    sq_y = jnp.sum(y ** 2, axis=-1, keepdims=True).T
    d = sq_x + sq_y - 2.0 * (x @ y.T)
    scale_x = sample_x @ scale[:, None]
    scale_y = sample_y @ scale[:, None]
    if not fixed_scale:
        scale_x = jnp.clip(jax.nn.softplus(scale_x), 1e-10, 1e4)
        scale_y = jnp.clip(jax.nn.softplus(scale_y), 1e-10, 1e4)
    scale_xy = jnp.sqrt(scale_x @ scale_y.T)
    return 1.0 / (1.0 + d / scale_xy)


if __name__ == "__main__":
    key = jax.random.PRNGKey(0)
    kx, ky, ksx, ksy = jax.random.split(key, 4)

    # Small, tile-friendly shapes: N cells, M inducing points, D latent dims,
    # B batches (one scale per batch).
    N, M, D, B = 256, 256, 256, 4
    x = jax.random.normal(kx, (N, D), dtype=jnp.float32)
    y = jax.random.normal(ky, (M, D), dtype=jnp.float32)
    scale = jnp.array([0.5, 1.0, 2.0, 4.0], dtype=jnp.float32)

    # One-hot sample -> batch assignment matrices, as in the SpaVAE usage.
    sx_idx = jax.random.randint(ksx, (N,), 0, B)
    sy_idx = jax.random.randint(ksy, (M,), 0, B)
    sample_x = jax.nn.one_hot(sx_idx, B, dtype=jnp.float32)
    sample_y = jax.nn.one_hot(sy_idx, B, dtype=jnp.float32)

    ref = _reference(x, y, sample_x, sample_y, scale)

    # Path 1: single-shot K (2-D grid, split so the parallel grid has >=2 blocks).
    out = batched_cauchy_forward(x, y, sample_x, sample_y, scale, fixed_scale=True)
    out = jax.block_until_ready(out)
    assert out.shape == (N, M)
    assert jnp.allclose(out, ref, atol=1e-5, rtol=1e-4), \
        f"single-shot max abs err = {jnp.max(jnp.abs(out - ref))}"

    # Path 2: K-tiled reduction (3-D grid, accumulator) -- force it with tk_max=128.
    out2 = batched_cauchy_forward(x, y, sample_x, sample_y, scale,
                                  fixed_scale=True, tk_max=128)
    out2 = jax.block_until_ready(out2)
    assert jnp.allclose(out2, ref, atol=1e-5, rtol=1e-4), \
        f"k-tiled max abs err = {jnp.max(jnp.abs(out2 - ref))}"

    # Path 3: learnable-scale variant (softplus + clamp after projection).
    ref_ls = _reference(x, y, sample_x, sample_y, scale, fixed_scale=False)
    out3 = batched_cauchy_forward(x, y, sample_x, sample_y, scale, fixed_scale=False)
    out3 = jax.block_until_ready(out3)
    assert jnp.allclose(out3, ref_ls, atol=1e-5, rtol=1e-4), \
        f"softplus-scale max abs err = {jnp.max(jnp.abs(out3 - ref_ls))}"

    # Path 4: bf16 output (compute stays f32, cast at the store; halves writeback).
    out4 = batched_cauchy_forward(x, y, sample_x, sample_y, scale,
                                  fixed_scale=True, out_dtype=jnp.bfloat16)
    out4 = jax.block_until_ready(out4)
    assert jnp.allclose(out4.astype(jnp.float32), ref, atol=1e-2, rtol=1e-2), \
        f"bf16-out max abs err = {jnp.max(jnp.abs(out4.astype(jnp.float32) - ref))}"

    print("KERNEL_OK")
</pallas_src>

<mosaic_0001>
module attributes {stable_mosaic.version = 11 : i64} {
  func.func @_cauchy_kernel_single(%arg0: i32, %arg1: i32, %arg2: memref<128x256xf32, #tpu.memory_space<vmem>>, %arg3: memref<256x256xf32, #tpu.memory_space<vmem>>, %arg4: memref<128x2xf32, #tpu.memory_space<vmem>>, %arg5: memref<2x256xf32, #tpu.memory_space<vmem>>, %arg6: memref<128x256xf32, #tpu.memory_space<vmem>>) attributes {dimension_semantics = [#tpu.dimension_semantics<parallel>, #tpu.dimension_semantics<parallel>], iteration_bounds = array<i64: 2, 1>, scalar_prefetch = 0 : i64, scratch_operands = 0 : i64, tpu.core_type = #tpu.core_type<tc>, window_params = [{transform_indices = @transform_0, window_bounds = array<i64: 128, 256>}, {transform_indices = @transform_1, window_bounds = array<i64: 256, 256>}, {transform_indices = @transform_2, window_bounds = array<i64: 128, 2>}, {transform_indices = @transform_3, window_bounds = array<i64: 2, 256>}, {transform_indices = @transform_4, window_bounds = array<i64: 128, 256>}]} {
    %c0 = arith.constant 0 : index
    %c0_0 = arith.constant 0 : index
    %0 = vector.load %arg2[%c0, %c0_0] : memref<128x256xf32, #tpu.memory_space<vmem>>, vector<128x256xf32>
    %c0_1 = arith.constant 0 : index
    %c0_2 = arith.constant 0 : index
    %1 = vector.load %arg3[%c0_1, %c0_2] : memref<256x256xf32, #tpu.memory_space<vmem>>, vector<256x256xf32>
    %cst = arith.constant dense<0.000000e+00> : vector<128x256xf32>
    %2 = tpu.matmul %0, %1, %cst {dimension_numbers = #tpu.dot_dimension_numbers<[1], [1], [0], [0], [0, 0, 1, 0], [], []>} : vector<128x256xf32>, vector<256x256xf32>, vector<128x256xf32> -> vector<128x256xf32>
    %c0_3 = arith.constant 0 : index
    %c0_4 = arith.constant 0 : index
    %3 = vector.load %arg4[%c0_3, %c0_4] : memref<128x2xf32, #tpu.memory_space<vmem>>, vector<128x2xf32>
    %c0_5 = arith.constant 0 : index
    %c0_6 = arith.constant 0 : index
    %4 = vector.load %arg5[%c0_5, %c0_6] : memref<2x256xf32, #tpu.memory_space<vmem>>, vector<2x256xf32>
    %5 = vector.extract_strided_slice %3 {offsets = [0, 0], sizes = [128, 1], strides = [1, 1]} : vector<128x2xf32> to vector<128x1xf32>
    %6 = vector.extract_strided_slice %3 {offsets = [0, 1], sizes = [128, 1], strides = [1, 1]} : vector<128x2xf32> to vector<128x1xf32>
    %7 = vector.extract_strided_slice %4 {offsets = [0, 0], sizes = [1, 256], strides = [1, 1]} : vector<2x256xf32> to vector<1x256xf32>
    %8 = vector.extract_strided_slice %4 {offsets = [1, 0], sizes = [1, 256], strides = [1, 1]} : vector<2x256xf32> to vector<1x256xf32>
    %9 = vector.broadcast %5 : vector<128x1xf32> to vector<128x256xf32>
    %10 = vector.broadcast %7 : vector<1x256xf32> to vector<128x256xf32>
    %11 = arith.addf %9, %10 : vector<128x256xf32>
    %cst_7 = arith.constant 2.000000e+00 : f32
    %12 = vector.broadcast %cst_7 : f32 to vector<128x256xf32>
    %13 = arith.mulf %12, %2 : vector<128x256xf32>
    %14 = arith.subf %11, %13 : vector<128x256xf32>
    %15 = vector.broadcast %6 : vector<128x1xf32> to vector<128x256xf32>
    %16 = vector.broadcast %8 : vector<1x256xf32> to vector<128x256xf32>
    %17 = arith.mulf %15, %16 : vector<128x256xf32>
    %18 = arith.addf %17, %14 : vector<128x256xf32>
    %19 = tpu.reciprocal %18 {approx = true} : vector<128x256xf32> -> vector<128x256xf32>
    %20 = arith.mulf %18, %19 : vector<128x256xf32>
    %cst_8 = arith.constant 2.000000e+00 : f32
    %21 = vector.broadcast %cst_8 : f32 to vector<128x256xf32>
    %22 = arith.subf %21, %20 : vector<128x256xf32>
    %23 = arith.mulf %19, %22 : vector<128x256xf32>
    %24 = arith.mulf %17, %23 : vector<128x256xf32>
    %c0_9 = arith.constant 0 : index
    %c0_10 = arith.constant 0 : index
    %25 = vector.load %arg6[%c0_9, %c0_10] : memref<128x256xf32, #tpu.memory_space<vmem>>, vector<128x256xf32>
    tpu.vector_store %arg6[%c0_9, %c0_10], %24 {strides = array<i32>} : memref<128x256xf32, #tpu.memory_space<vmem>>, vector<128x256xf32>,
    return
  }
  func.func @transform_0(%arg0: i32, %arg1: i32) -> (i32, i32) {
    %c0_i32 = arith.constant 0 : i32
    %c0_i32_0 = arith.constant 0 : i32
    return %arg0, %c0_i32 : i32, i32
  }
  func.func @transform_1(%arg0: i32, %arg1: i32) -> (i32, i32) {
    %c0_i32 = arith.constant 0 : i32
    %c0_i32_0 = arith.constant 0 : i32
    return %arg1, %c0_i32 : i32, i32
  }
  func.func @transform_2(%arg0: i32, %arg1: i32) -> (i32, i32) {
    %c0_i32 = arith.constant 0 : i32
    %c0_i32_0 = arith.constant 0 : i32
    return %arg0, %c0_i32 : i32, i32
  }
  func.func @transform_3(%arg0: i32, %arg1: i32) -> (i32, i32) {
    %c0_i32 = arith.constant 0 : i32
    %c0_i32_0 = arith.constant 0 : i32
    return %c0_i32, %arg1 : i32, i32
  }
  func.func @transform_4(%arg0: i32, %arg1: i32) -> (i32, i32) {
    %c0_i32 = arith.constant 0 : i32
    return %arg0, %arg1 : i32, i32
  }
}

</mosaic_0001>

<bundles_post_ra>
// kernel: tpu_custom_call.1
= control target key start
LH: loop header
LB: loop body
LE: loop exit
PB: predicated region body
PF: predicated region fallthrough
CT: control target
= control target key end

     0   :  { %9 = vsyncpa [#allocation3], 0  ;;  %s2505_s0 = inlined_call_operand.hbm [shape: f32[256,256], index: 0, kind: input, shape index: {}]   ;;  %s2506_s1 = inlined_call_operand.hbm [shape: f32[256,256], index: 1, kind: input, shape index: {}]   ;;  %s2507_s2 = inlined_call_operand.vmem [shape: f32[256,2], index: 2, kind: input, shape index: {}]   ;;  %s2508_s3 = inlined_call_operand.vmem [shape: f32[2,256], index: 3, kind: input, shape index: {}]   ;;  %s2509_s4 = inlined_call_operand.hbm [shape: f32[256,256], index: 4, kind: output, shape index: {}]  }
   0x1   :  { %11 = vsyncpa [#allocation3 + $0x1], 0 }
   0x2   :  { %12 = vsyncpa [#allocation6], 0 }
   0x3   :  { %13 = vsyncpa [#allocation4], 0 }
   0x4   :  { %15 = vsyncpa [#allocation4 + $0x1], 0  ;;  %s1699_s15 = smov 0   ;;  %s1701_s16 = smov 0  }
   0x5   :  { %s1703_s17 = smov 0   ;;  %s1705_s18 = smov 0  }
   0x6   :  { %s1707_s19 = smov 0   ;;  %s1709_s20 = smov 0  }
   0x7 LB: > { %s1250_s21 = sadd.s32 4294967295, %s1663_s20   ;;  %s1251_s22 = sadd.s32 4294967294, %s1663_s20   ;;  %s1663_s20 = sphi %s1709_s20, %s21_s20   ;;  %s1659_s19 = sphi %s1707_s19, %s2606_s19   ;;  %s1655_s18 = sphi %s1705_s18, %s2605_s18   ;;  %s1651_s17 = sphi %s1703_s17, %s2604_s17   ;;  %s1647_s16 = sphi %s1701_s16, %s2603_s16   ;;  %s1643_s15 = sphi %s1699_s15, %s2602_s15  }
   0x8   : > { %p53_p0 = scmp.ne.s32.totalorder %s1647_s16, %s1643_s15  ;;  %p1733_p1 = scmp.eq.s32.totalorder %s1250_s21, 0 }
   0x9   : > { %p1737_p2 = scmp.eq.s32.totalorder %s1250_s21, 1  ;;  %p163_p3 = scmp.eq.s32.totalorder %s1251_s22, 1 }
   0xa   : > { %s2529_s23 = scalar_select %p1733_p1, 1, 0 }
   0xb   : > { %s2530_s24 = scalar_select %p1737_p2, 1, 0 }
   0xc   : > { %p1743_p4 = por %p1733_p1, %p53_p0  ;;  %p1252_p5 = scmp.ge.s32.totalorder %s1663_s20, 1 }
   0xd   : > { %p1748_p6 = por %p163_p3, %p53_p0  ;;  %p170_p7 = scmp.lt.s32.totalorder %s1663_s20, 3 }
   0xe   : > { %s2531_s25 = scalar_select %p1743_p4, 1, 0 }
   0xf   : > { %s2532_s26 = scalar_select %p1748_p6, 1, 0 }
  0x10   : > { %p1753_p8 = pnand %p1252_p5, %p170_p7  ;;  %s1665_s28 = smov [#allocation5]  }
  0x11   : > { %s186_s29 = sshll.u32 %s1665_s28, 4  ;;  %s33_s5 = sadd.s32 1, %s1659_s19  ;;  %s187_s29 = int_to_ptr.vmem [resolvable:$true] %s186_s29 }
  0x12   : > { %s2533_s27 = scalar_select %p1753_p8, 1, 0 }
  0x13   : > { %p1380_p9 = pneg %p1753_p8  ;;  %s1519_s8 = scalar_lea.hbm %s2506_s1, 8192 }
  0x14   : > { %p1520_p12 = scmp.ne.s32.totalorder %s2506_s1, %s1519_s8  ;;  %p1526_p5 = scmp.lt.u32.totalorder %s1519_s8, %s2506_s1 }
  0x15   : > { %p1762_p11 = pnand %p1380_p9, %p1733_p1 }
  0x17   : > { %p1521_p13 = pneg %p1762_p11 }
  0x19   : > { %p1522_p0 = pnand %p1521_p13, %p1520_p12 }
  0x1b   : > { %p1523_p3 = pneg %p1522_p0 }
  0x1d   : > { %p1528_p7 = pnand %p1526_p5, %p1523_p3 }
  0x1f   : > { %1531 = shalt.err (!%p1528_p7)
}
  0x20   : > { %s1532_s13 = scalar_lea.vmem %s187_s29, 8192  ;;  %p1540_p1 = scmp.lt.s32.totalorder %s187_s29, %s187_s29 }
  0x21   : > { %p1533_p9 = scmp.ne.s32.totalorder %s187_s29, %s1532_s13  ;;  %p1541_p4 = scmp.lt.s32.totalorder %s1532_s13, %s1532_s13 }
  0x23   : > { %p1535_p10 = pnand %p1533_p9, %p1521_p13  ;;  %p1542_p8 = por %p1541_p4, %p1540_p1 }
  0x25   : > { %p1536_p6 = pneg %p1535_p10 }
  0x27   : > { %p1543_p2 = pnand %p1542_p8, %p1536_p6 }
  0x29   : > { %1546 = shalt.err (!%p1543_p2)
}
  0x2a   : > { %s1666_s14 = smov 256   ;;  %s1667_s21 = smov 16  }
  0x2b   : > { %1383 = dma.hbm_to_vmem [thread:$0]  (!%p1762_p11), %s2506_s1, 8192, %s187_s29, [#allocation6], %s1666_s14, %s1666_s14, %s1667_s21  }
  0x2c   : > { %p35_p1 = scmp.ge.s32.totalorder %s33_s5, 2  ;;  %s40_s6 = sadd.s32 1, %s1651_s17 }
  0x2d   : > { %p47_p2 = scmp.ne.s32.totalorder %s1651_s17, %s1647_s16  ;;  %p48_p4 = scmp.eq.s32.totalorder %s1663_s20, 0 }
  0x2e   : > { %s2608_s5 = smov (%p35_p1, %s33_s5), 0  ;;  %p2536_p8 = scmp.ne.s32.totalorder %s2530_s24, 0 }
  0x2f   : > { %p1792_p6 = por %p48_p4, %p47_p2  ;;  %s37_s8 = ssub.s32 %s1659_s19, %s2608_s5 }
  0x30   : > { %p1798_p10 = por %p2536_p8, %p47_p2  ;;  %p1393_p12 = scmp.lt.s32.totalorder %s1663_s20, 2 }
  0x31   : > { %p38_p11 = scmp.eq.s32.totalorder %s37_s8, 0  ;;  %s209_s29 = sand.u32 1, %s1651_s17  }
  0x32   : > { %s1256_s9 = sshll.u32 %s209_s29, 8  ;;  %s1273_s11 = sshll.u32 %s1659_s19, 12 }
  0x33   : > { %s1807_s10 = scalar_select %p38_p11, %s1651_s17, %s40_s6  }
  0x34   : > { %s1813_s22 = scalar_lea.hbm %s2505_s0, %s1273_s11  ;;  %s213_s24 = scalar_lea.vmem [#allocation2], %s1256_s9 }
  0x35   : > { %s221_s28 = sshll.u32 %s213_s24, 4  ;;  %p1819_p13 = pnand %p1393_p12, %p1792_p6  ;;  %s1815_s28 = int_to_ptr.vmem [resolvable:$true] %s221_s28 }
  0x36   : > { %s1823_s6 = scalar_lea.sflag [#allocation3], %s209_s29  ;;  %s1547_s12 = scalar_lea.hbm %s1813_s22, 4096 }
  0x37   : > { %p1548_p0 = scmp.ne.s32.totalorder %s1813_s22, %s1547_s12  ;;  %p1549_p3 = pneg %p1819_p13 }
  0x38   : > { %s1552_s7 = scalar_lea.hbm %s2505_s0, 8192  ;;  %p1553_p9 = scmp.lt.u32.totalorder %s1813_s22, %s2505_s0 }
  0x39   : > { %p1550_p5 = pnand %p1549_p3, %p1548_p0  ;;  %p1554_p1 = scmp.lt.u32.totalorder %s1552_s7, %s1547_s12 }
  0x3a   : > { %p1556_p4 = scmp.lt.u32.totalorder %s1547_s12, %s1813_s22 }
  0x3b   : > { %p1551_p7 = pneg %p1550_p5  ;;  %p1555_p2 = por %p1554_p1, %p1553_p9 }
  0x3d   : > { %p1557_p6 = por %p1556_p4, %p1555_p2 }
  0x3f   : > { %p1558_p8 = pnand %p1557_p6, %p1551_p7 }
  0x41   : > { %1561 = shalt.err (!%p1558_p8)
}
  0x42   : > { %s1562_s29 = scalar_lea.vmem %s1815_s28, 4096  ;;  %s1668_s9 = smov [#allocation2]  }
  0x43   : > { %p1563_p12 = scmp.ne.s32.totalorder %s1815_s28, %s1562_s29  ;;  %s1567_s11 = sshll.u32 %s1668_s9, 4  ;;  %s1568_s11 = int_to_ptr.vmem [resolvable:$false] %s1567_s11 }
  0x44   : > { %s1569_s13 = scalar_lea.vmem %s1568_s11, 8192  ;;  %p1570_p5 = scmp.lt.s32.totalorder %s1815_s28, %s1568_s11 }
  0x45   : > { %p1565_p11 = pnand %p1563_p12, %p1549_p3  ;;  %p1571_p9 = scmp.lt.s32.totalorder %s1569_s13, %s1562_s29 }
  0x47   : > { %p1566_p0 = pneg %p1565_p11  ;;  %p1572_p1 = por %p1571_p9, %p1570_p5 }
  0x49   : > { %p1573_p2 = pnand %p1572_p1, %p1566_p0 }
  0x4b   : > { %1576 = shalt.err (!%p1573_p2)
}
  0x4c   : > { %1387 = dma.hbm_to_vmem [thread:$0]  (!%p1819_p13), %s1813_s22, 4096, %s1815_s28, %s1823_s6, %s1666_s14, %s1666_s14, %s1667_s21  }
  0x4d   : > { %p2539_p3 = scmp.ne.s32.totalorder %s2533_s27, 0 }
  0x4f   : > { %242 = sbr.rel (%p2539_p3) target bundleno = 526 (0x20e), region = 36 }
  0x56   : > { %s1857_s12 = sand.u32 1, %s1647_s16   ;;  %p2540_p7 = scmp.ne.s32.totalorder %s2531_s25, 0 }
  0x57   : > { %s1261_s7 = sshll.u32 %s1857_s12, 8  ;;  %s245_s24 = scalar_lea.sflag [#allocation3], %s1857_s12 }
  0x58   : > { %s1863_s8 = scalar_lea.vmem [#allocation2], %s1261_s7 }
  0x59   : > { %1630 = dma.done.wait (%p2540_p7), %s245_s24, 4096  }
  0x5a   : > { %1632 = vsyncadd (%p2540_p7), %s245_s24, 4294963200  ;;  %p2541_p13 = scmp.ne.s32.totalorder %s2529_s23, 0 }
  0x5c   : > { %1634 = dma.done.wait (%p2541_p13), [#allocation6], 8192  }
  0x5d   : > { %1636 = vsyncadd (%p2541_p13), [#allocation6], 4294959104  ;;  %v336_v0 = vld [vmem:[#allocation5 + $0x8] sm:$0xff]  ;;  %v338_v1 = vld [vmem:[#allocation5 + $0x18] sm:$0xff]  ;;  %s1264_s23 = sshll.u32 %s1655_s18, 4  ;;  %v1669_v33 = vmov 0  }
  0x5e   : > { %v335_v2 = vld [vmem:[#allocation5] sm:$0xff]  ;;  %v1276_v3 = vpack.c.bf16 %v338_v1, %v336_v0  ;;  %v337_v4 = vld [vmem:[#allocation5 + $0x10] sm:$0xff]  ;;  %v340_v5 = vld [vmem:[#allocation5 + $0x28] sm:$0xff]  ;;  %p290_p4 = scmp.lt.s32.totalorder %s1264_s23, 31  ;;  %1452 = vset.pattern.permute.xlu1 %v1669_v33  ;;  %1451 = vset.pattern.permute.xlu0 %v1669_v33  ;;  %s2287_s6 = scalar_lea.vmem [#allocation7], %s1261_s7 }
  0x5f   : > { %v342_v6 = vld [vmem:[#allocation5 + $0x38] sm:$0xff]  ;;  %v1278_v7 = vpack.c.bf16 %v337_v4, %v335_v2  ;;  %v339_v9 = vld [vmem:[#allocation5 + $0x20] sm:$0xff]  ;;  %v341_v10 = vld [vmem:[#allocation5 + $0x30] sm:$0xff]  ;;  %s1275_s29 = sshll.u32 %s1655_s18, 12  ;;  %s1127_s9 = sshll.u32 %s2287_s6, 4  ;;  %s2452_s9 = int_to_ptr.vmem [resolvable:$true] %s1127_s9 }
  0x60   : > { %v1280_v8 = vpack.c.bf16 %v342_v6, %v340_v5  ;;  %1277 = vmatprep.subr.bf16.mxu0 %v1276_v3  ;;  %1340 = vmatprep.subr.bf16.mxu1 %v1276_v3  ;;  %v344_v11 = vld [vmem:[#allocation5 + $0x48] sm:$0xff]  ;;  %v346_v12 = vld [vmem:[#allocation5 + $0x58] sm:$0xff]  ;;  %v1282_v13 = vpack.c.bf16 %v341_v10, %v339_v9  ;;  %v343_v15 = vld [vmem:[#allocation5 + $0x40] sm:$0xff]  ;;  %s2610_s23 = smov (!%p290_p4, %s1264_s23), 31  ;;  %v1670_v10 = vmov 1   ;;  %s2450_s7 = scalar_lea.hbm %s2509_s4, %s1275_s29 }
  0x61   : > { %1279 = vmatpush1.bf16.xpose.msra.mxu0 %v1278_v7  ;;  %1356 = vmatpush1.bf16.xpose.msra.mxu1 %v1278_v7  ;;  %v1284_v14 = vpack.c.bf16 %v346_v12, %v344_v11  ;;  %v345_v16 = vld [vmem:[#allocation5 + $0x50] sm:$0xff]  ;;  %v348_v17 = vld [vmem:[#allocation5 + $0x68] sm:$0xff]  ;;  %v350_v18 = vld [vmem:[#allocation5 + $0x78] sm:$0xff]  ;;  %s1265_s25 = sshll.u32 %s2610_s23, 3  ;;  %s1111_s18 = scalar_lea.sflag [#allocation4], %s1857_s12 }
  0x62   : > { %1281 = vmatprep.subr.bf16.mxu0 %v1280_v8  ;;  %1341 = vmatprep.subr.bf16.mxu1 %v1280_v8  ;;  %v1286_v19 = vpack.c.bf16 %v345_v16, %v343_v15  ;;  %v1288_v20 = vpack.c.bf16 %v350_v18, %v348_v17  ;;  %v347_v21 = vld [vmem:[#allocation5 + $0x60] sm:$0xff]  ;;  %v349_v22 = vld [vmem:[#allocation5 + $0x70] sm:$0xff]  ;;  %v304_v23 = vld [vmem:[%s1863_s8 + $0x8] sm:$0xff]  ;;  %s1879_s21 = scalar_lea.vmem %s2507_s2, %s1265_s25  ;;  %s1577_s24 = scalar_lea.vmem %s2452_s9, 4096 }
  0x63   : > { %v320_v24 = vld [vmem:[%s1863_s8 + $0x88] sm:$0xff]  ;;  %v354_v26 = vld [vmem:[#allocation5 + $0x98] sm:$0xff]  ;;  %463 = vmatprep.mubr.f32.mxu0 %v304_v23  ;;  %v1290_v27 = vpack.c.bf16 %v349_v22, %v347_v21  ;;  %v351_v29 = vld [vmem:[#allocation5 + $0x80] sm:$0xff]  ;;  %p1578_p6 = scmp.ne.s32.totalorder %s2452_s9, %s1577_s24 }
  0x64   : > { %v352_v25 = vld [vmem:[#allocation5 + $0x88] sm:$0xff]  ;;  %511 = vmatprep.mubr.f32.mxu1 %v320_v24  ;;  %v353_v30 = vld [vmem:[#allocation5 + $0x90] sm:$0xff]  ;;  %v358_v32 = vld [vmem:[#allocation5 + $0xb8] sm:$0xff] }
  0x65   : > { %v1292_v28 = vpack.c.bf16 %v354_v26, %v352_v25  ;;  %v356_v31 = vld [vmem:[#allocation5 + $0xa8] sm:$0xff]  ;;  %v1882_v34 = vld [vmem:[%s1879_s21 + $0x10] sm:$0xff]  ;;  %v1886_v35 = vld [vmem:[%s1879_s21] sm:$0xff]  ;;  %v1294_v36 = vpack.c.bf16 %v353_v30, %v351_v29  ;;  %p1579_p8 = pnand %p1578_p6, %p1798_p10 }
  0x66   : > { %589 = vperm.xlu1 %1452, %v1882_v34   ;;  %579 = vperm.xlu0 %1451, %v1886_v35   ;;  %v1890_v37 = vld [vmem:[%s1879_s21 + $0x18] sm:$0xff]  ;;  %v1296_v38 = vpack.c.bf16 %v358_v32, %v356_v31  ;;  %v1894_v39 = vld [vmem:[%s1879_s21 + $0x8] sm:$0xff]  ;;  %v355_v41 = vld [vmem:[#allocation5 + $0xa0] sm:$0xff] }
  0x67   : > { %v1897_v40 = vld [vmem:[%s1879_s21 + $0x28] sm:$0xff]  ;;  %v357_v42 = vld [vmem:[#allocation5 + $0xb0] sm:$0xff]  ;;  %v362_v44 = vld [vmem:[#allocation5 + $0xd8] sm:$0xff]  ;;  %p1580_p12 = pneg %p1579_p8 }
  0x68   : > { %v360_v43 = vld [vmem:[#allocation5 + $0xc8] sm:$0xff]  ;;  %v1902_v45 = vld [vmem:[%s1879_s21 + $0x20] sm:$0xff]  ;;  %v1298_v46 = vpack.c.bf16 %v357_v42, %v355_v41  ;;  %v1905_v47 = vld [vmem:[%s1879_s21 + $0x38] sm:$0xff] }
  0x69   : > { %1283 = vmatpush1.bf16.xpose.msra.mxu0 %v1282_v13  ;;  %1357 = vmatpush1.bf16.xpose.msra.mxu1 %v1282_v13  ;;  %v1300_v48 = vpack.c.bf16 %v362_v44, %v360_v43  ;;  %v1910_v49 = vld [vmem:[%s1879_s21 + $0x30] sm:$0xff]  ;;  %v1913_v50 = vld [vmem:[%s1879_s21 + $0x48] sm:$0xff]  ;;  %v359_v51 = vld [vmem:[#allocation5 + $0xc0] sm:$0xff] }
  0x6a   : > { %1285 = vmatprep.subr.bf16.mxu0 %v1284_v14  ;;  %1342 = vmatprep.subr.bf16.mxu1 %v1284_v14  ;;  %v361_v52 = vld [vmem:[#allocation5 + $0xd0] sm:$0xff]  ;;  %v364_v53 = vld [vmem:[#allocation5 + $0xe8] sm:$0xff]  ;;  %v366_v54 = vld [vmem:[#allocation5 + $0xf8] sm:$0xff] }
  0x6b   : > { %594 = vperm.xlu1 %1452, %v1890_v37   ;;  %584 = vperm.xlu0 %1451, %v1894_v39   ;;  %v1918_v55 = vld [vmem:[%s1879_s21 + $0x40] sm:$0xff]  ;;  %v1302_v56 = vpack.c.bf16 %v361_v52, %v359_v51  ;;  %v1921_v57 = vld [vmem:[%s1879_s21 + $0x58] sm:$0xff]  ;;  %v1304_v58 = vpack.c.bf16 %v366_v54, %v364_v53  ;;  %v1926_v59 = vld [vmem:[%s1879_s21 + $0x50] sm:$0xff] }
  0x6c   : > { %v1929_v60 = vld [vmem:[%s1879_s21 + $0x68] sm:$0xff]  ;;  %v363_v61 = vld [vmem:[#allocation5 + $0xe0] sm:$0xff]  ;;  %v365_v62 = vld [vmem:[#allocation5 + $0xf0] sm:$0xff] }
  0x6d   : > { %v368_v63 = vld [vmem:[#allocation5 + $0x108] sm:$0xff]  ;;  %v370_v0 = vld [vmem:[#allocation5 + $0x118] sm:$0xff]  ;;  %v1934_v1 = vld [vmem:[%s1879_s21 + $0x60] sm:$0xff]  ;;  %v1306_v2 = vpack.c.bf16 %v365_v62, %v363_v61 }
  0x6e   : > { %v1937_v3 = vld [vmem:[%s1879_s21 + $0x78] sm:$0xff]  ;;  %v1308_v4 = vpack.c.bf16 %v370_v0, %v368_v63  ;;  %v1942_v5 = vld [vmem:[%s1879_s21 + $0x70] sm:$0xff]  ;;  %v367_v6 = vld [vmem:[#allocation5 + $0x100] sm:$0xff] }
  0x6f   : > { %604 = vperm.xlu1 %1452, %v1897_v40   ;;  %599 = vperm.xlu0 %1451, %v1902_v45   ;;  %v369_v7 = vld [vmem:[#allocation5 + $0x110] sm:$0xff]  ;;  %v372_v8 = vld [vmem:[#allocation5 + $0x128] sm:$0xff]  ;;  %v374_v9 = vld [vmem:[#allocation5 + $0x138] sm:$0xff] }
  0x70   : > { %v1310_v11 = vpack.c.bf16 %v369_v7, %v367_v6  ;;  %v1312_v12 = vpack.c.bf16 %v374_v9, %v372_v8  ;;  %v371_v13 = vld [vmem:[#allocation5 + $0x120] sm:$0xff]  ;;  %v373_v14 = vld [vmem:[#allocation5 + $0x130] sm:$0xff]  ;;  %v376_v15 = vld [vmem:[#allocation5 + $0x148] sm:$0xff] }
  0x71   : > { %1287 = vmatpush1.bf16.xpose.msra.mxu0 %v1286_v19  ;;  %1358 = vmatpush1.bf16.xpose.msra.mxu1 %v1286_v19  ;;  %v378_v16 = vld [vmem:[#allocation5 + $0x158] sm:$0xff]  ;;  %v1314_v17 = vpack.c.bf16 %v373_v14, %v371_v13  ;;  %v375_v19 = vld [vmem:[#allocation5 + $0x140] sm:$0xff]  ;;  %v380_v21 = vld [vmem:[#allocation5 + $0x168] sm:$0xff] }
  0x72   : > { %1289 = vmatprep.subr.bf16.mxu0 %v1288_v20  ;;  %1343 = vmatprep.subr.bf16.mxu1 %v1288_v20  ;;  %v1316_v18 = vpack.c.bf16 %v378_v16, %v376_v15  ;;  %v377_v20 = vld [vmem:[#allocation5 + $0x150] sm:$0xff]  ;;  %v382_v22 = vld [vmem:[#allocation5 + $0x178] sm:$0xff]  ;;  %v379_v25 = vld [vmem:[#allocation5 + $0x160] sm:$0xff] }
  0x73   : > { %614 = vperm.xlu1 %1452, %v1905_v47   ;;  %609 = vperm.xlu0 %1451, %v1910_v49   ;;  %v1318_v23 = vpack.c.bf16 %v377_v20, %v375_v19  ;;  %v1320_v24 = vpack.c.bf16 %v382_v22, %v380_v21  ;;  %v381_v26 = vld [vmem:[#allocation5 + $0x170] sm:$0xff]  ;;  %v383_v31 = vld [vmem:[#allocation5 + $0x180] sm:$0xff]  ;;  %v388_v33 = vld [vmem:[#allocation5 + $0x1a8] sm:$0xff] }
  0x74   : > { %v1322_v29 = vpack.c.bf16 %v381_v26, %v379_v25  ;;  %v385_v32 = vld [vmem:[#allocation5 + $0x190] sm:$0xff]  ;;  %v391_v43 = vld [vmem:[#allocation5 + $0x1c0] sm:$0xff]  ;;  %v306_v54 = vld [vmem:[%s1863_s8 + $0x18] sm:$0xff] }
  0x75   : > { %v393_v44 = vld [vmem:[#allocation5 + $0x1d0] sm:$0xff]  ;;  %v303_v52 = vld [vmem:[%s1863_s8] sm:$0xff]  ;;  %v310_v62 = vld [vmem:[%s1863_s8 + $0x38] sm:$0xff] }
  0x76   : > { %v319_v53 = vld [vmem:[%s1863_s8 + $0x80] sm:$0xff]  ;;  %v326_v63 = vld [vmem:[%s1863_s8 + $0xb8] sm:$0xff]  ;;  %v309_v0 = vld [vmem:[%s1863_s8 + $0x30] sm:$0xff] }
  0x77   : > { %624 = vperm.xlu1 %1452, %v1913_v50   ;;  %619 = vperm.xlu0 %1451, %v1918_v55   ;;  %v323_v61 = vld [vmem:[%s1863_s8 + $0xa0] sm:$0xff]  ;;  %v314_v6 = vld [vmem:[%s1863_s8 + $0x58] sm:$0xff]  ;;  %v313_v8 = vld [vmem:[%s1863_s8 + $0x50] sm:$0xff] }
  0x78   : > { %v330_v7 = vld [vmem:[%s1863_s8 + $0xd8] sm:$0xff]  ;;  %v329_v9 = vld [vmem:[%s1863_s8 + $0xd0] sm:$0xff]  ;;  %v331_v13 = vld [vmem:[%s1863_s8 + $0xe0] sm:$0xff] }
  0x79   : > { %1291 = vmatpush1.bf16.xpose.msra.mxu0 %v1290_v27  ;;  %1359 = vmatpush1.bf16.xpose.msra.mxu1 %v1290_v27  ;;  %v384_v27 = vld [vmem:[#allocation5 + $0x188] sm:$0xff]  ;;  %v318_v14 = vld [vmem:[%s1863_s8 + $0x78] sm:$0xff]  ;;  %v317_v16 = vld [vmem:[%s1863_s8 + $0x70] sm:$0xff] }
  0x7a   : > { %1293 = vmatprep.subr.bf16.mxu0 %v1292_v28  ;;  %1344 = vmatprep.subr.bf16.mxu1 %v1292_v28  ;;  %v386_v28 = vld [vmem:[#allocation5 + $0x198] sm:$0xff] }
  0x7b   : > { %634 = vperm.xlu1 %1452, %v1921_v57   ;;  %629 = vperm.xlu0 %1451, %v1926_v59   ;;  %v1324_v30 = vpack.c.bf16 %v386_v28, %v384_v27  ;;  %v334_v15 = vld [vmem:[%s1863_s8 + $0xf8] sm:$0xff] }
  0x7f   : > { %644 = vperm.xlu1 %1452, %v1929_v60   ;;  %639 = vperm.xlu0 %1451, %v1934_v1  }
  0x81   : > { %1295 = vmatpush1.bf16.xpose.msra.mxu0 %v1294_v36  ;;  %1360 = vmatpush1.bf16.xpose.msra.mxu1 %v1294_v36 }
  0x82   : > { %1297 = vmatprep.subr.bf16.mxu0 %v1296_v38  ;;  %1345 = vmatprep.subr.bf16.mxu1 %v1296_v38  ;;  %v389_v38 = vld [vmem:[#allocation5 + $0x1b0] sm:$0xff] }
  0x83   : > { %654 = vperm.xlu1 %1452, %v1937_v3   ;;  %649 = vperm.xlu0 %1451, %v1942_v5  }
  0x87   : > { %1454 = vset.pattern.permute.xlu1 %v1670_v10  ;;  %1453 = vset.pattern.permute.xlu0 %v1670_v10  ;;  %v316_v10 = vld [vmem:[%s1863_s8 + $0x68] sm:$0xff] }
  0x88   : > { %777 = vperm.xlu1 %1454, %v1894_v39   ;;  %773 = vperm.xlu0 %1453, %v1886_v35   ;;  %v1326_v35 = vpack.c.bf16 %v385_v32, %v383_v31  ;;  %v392_v39 = vld [vmem:[#allocation5 + $0x1c8] sm:$0xff] }
  0x89   : > { %1299 = vmatpush1.bf16.xpose.msra.mxu0 %v1298_v46  ;;  %1361 = vmatpush1.bf16.xpose.msra.mxu1 %v1298_v46  ;;  %v398_v46 = vld [vmem:[#allocation5 + $0x1f8] sm:$0xff] }
  0x8a   : > { %1301 = vmatprep.subr.bf16.mxu0 %v1300_v48  ;;  %1346 = vmatprep.subr.bf16.mxu1 %v1300_v48 }
  0x8c   : > { %781 = vperm.xlu1 %1454, %v1882_v34   ;;  %785 = vperm.xlu0 %1453, %v1890_v37   ;;  %v390_v34 = vld [vmem:[#allocation5 + $0x1b8] sm:$0xff]  ;;  %v387_v37 = vld [vmem:[#allocation5 + $0x1a0] sm:$0xff] }
  0x8d   : > { %v1328_v36 = vpack.c.bf16 %v390_v34, %v388_v33  ;;  %v1330_v41 = vpack.c.bf16 %v389_v38, %v387_v37  ;;  %v658_v37 = vlaneseq }
  0x90   : > { %789 = vperm.xlu1 %1454, %v1902_v45   ;;  %793 = vperm.xlu0 %1453, %v1897_v40   ;;  %v394_v40 = vld [vmem:[#allocation5 + $0x1d8] sm:$0xff]  ;;  %v396_v45 = vld [vmem:[#allocation5 + $0x1e8] sm:$0xff] }
  0x91   : > { %1303 = vmatpush1.bf16.xpose.msra.mxu0 %v1302_v56  ;;  %1362 = vmatpush1.bf16.xpose.msra.mxu1 %v1302_v56  ;;  %v1332_v42 = vpack.c.bf16 %v394_v40, %v392_v39  ;;  %v1336_v48 = vpack.c.bf16 %v398_v46, %v396_v45  ;;  %v305_v56 = vld [vmem:[%s1863_s8 + $0x10] sm:$0xff]  ;;  %v659_v39 = vshrl.u32 %v658_v37, 7 }
  0x92   : > { %1305 = vmatprep.subr.bf16.mxu0 %v1304_v58  ;;  %1347 = vmatprep.subr.bf16.mxu1 %v1304_v58  ;;  %v308_v58 = vld [vmem:[%s1863_s8 + $0x28] sm:$0xff] }
  0x93   : > { %v838_v45 = vsub.s32 1, %v659_v39 }
  0x94   : > { %797 = vperm.xlu1 %1454, %v1910_v49   ;;  %801 = vperm.xlu0 %1453, %v1905_v47   ;;  %v1334_v47 = vpack.c.bf16 %v393_v44, %v391_v43  ;;  %v395_v49 = vld [vmem:[#allocation5 + $0x1e0] sm:$0xff]  ;;  %v664_v43 = vsub.s32 2, %v659_v39 }
  0x95   : > { %v576_v44 = vld [vmem:[%s2508_s3] sm:$0xf] }
  0x98   : > { %805 = vperm.xlu1 %1454, %v1918_v55   ;;  %809 = vperm.xlu0 %1453, %v1913_v50   ;;  %v397_v50 = vld [vmem:[#allocation5 + $0x1f0] sm:$0xff]  ;;  %v322_v55 = vld [vmem:[%s1863_s8 + $0x98] sm:$0xff] }
  0x99   : > { %1307 = vmatpush1.bf16.xpose.msra.mxu0 %v1306_v2  ;;  %1363 = vmatpush1.bf16.xpose.msra.mxu1 %v1306_v2  ;;  %v1338_v51 = vpack.c.bf16 %v397_v50, %v395_v49  ;;  %v312_v2 = vld [vmem:[%s1863_s8 + $0x48] sm:$0xff]  ;;  %v842_v49 = vsub.s32 3, %v659_v39 }
  0x9a   : > { %1309 = vmatprep.subr.bf16.mxu0 %v1308_v4  ;;  %1348 = vmatprep.subr.bf16.mxu1 %v1308_v4  ;;  %v311_v4 = vld [vmem:[%s1863_s8 + $0x40] sm:$0xff] }
  0x9c   : > { %813 = vperm.xlu1 %1454, %v1926_v59   ;;  %817 = vperm.xlu0 %1453, %v1921_v57   ;;  %v321_v57 = vld [vmem:[%s1863_s8 + $0x90] sm:$0xff]  ;;  %v324_v59 = vld [vmem:[%s1863_s8 + $0xa8] sm:$0xff] }
  0xa0   : > { %821 = vperm.xlu1 %1454, %v1934_v1   ;;  %825 = vperm.xlu0 %1453, %v1929_v60   ;;  %v307_v60 = vld [vmem:[%s1863_s8 + $0x20] sm:$0xff]  ;;  %v325_v1 = vld [vmem:[%s1863_s8 + $0xb0] sm:$0xff] }
  0xa1   : > { %1311 = vmatpush1.bf16.xpose.msra.mxu0 %v1310_v11  ;;  %1364 = vmatpush1.bf16.xpose.msra.mxu1 %v1310_v11  ;;  %v332_v11 = vld [vmem:[%s1863_s8 + $0xe8] sm:$0xff] }
  0xa2   : > { %1313 = vmatprep.subr.bf16.mxu0 %v1312_v12  ;;  %1349 = vmatprep.subr.bf16.mxu1 %v1312_v12  ;;  %v315_v12 = vld [vmem:[%s1863_s8 + $0x60] sm:$0xff] }
  0xa4   : > { %829 = vperm.xlu1 %1454, %v1942_v5   ;;  %833 = vperm.xlu0 %1453, %v1937_v3   ;;  %v328_v3 = vld [vmem:[%s1863_s8 + $0xc8] sm:$0xff]  ;;  %v327_v5 = vld [vmem:[%s1863_s8 + $0xc0] sm:$0xff] }
  0xa9   : > { %1315 = vmatpush1.bf16.xpose.msra.mxu0 %v1314_v17  ;;  %1365 = vmatpush1.bf16.xpose.msra.mxu1 %v1314_v17  ;;  %v333_v17 = vld [vmem:[%s1863_s8 + $0xf0] sm:$0xff]  ;;  %s1671_s8 = smov [#allocation7]  }
  0xaa   : > { %1317 = vmatprep.subr.bf16.mxu0 %v1316_v18  ;;  %1350 = vmatprep.subr.bf16.mxu1 %v1316_v18  ;;  %s1581_s23 = sshll.u32 %s1671_s8, 4  ;;  %s1582_s23 = int_to_ptr.vmem [resolvable:$false] %s1581_s23 }
  0xab   : > { %s1583_s25 = scalar_lea.vmem %s1582_s23, 8192  ;;  %p1584_p11 = scmp.lt.s32.totalorder %s2452_s9, %s1582_s23 }
  0xac   : > { %p1585_p0 = scmp.lt.s32.totalorder %s1583_s25, %s1577_s24 }
  0xae   : > { %p1586_p5 = por %p1585_p0, %p1584_p11 }
  0xb0   : > { %p1587_p9 = pnand %p1586_p5, %p1580_p12 }
  0xb1   : > { %1319 = vmatpush1.bf16.xpose.msra.mxu0 %v1318_v23  ;;  %1366 = vmatpush1.bf16.xpose.msra.mxu1 %v1318_v23 }
  0xb2   : > { %1321 = vmatprep.subr.bf16.mxu0 %v1320_v24  ;;  %1351 = vmatprep.subr.bf16.mxu1 %v1320_v24 }
  0xb9   : > { %1323 = vmatpush1.bf16.xpose.msra.mxu0 %v1322_v29  ;;  %1367 = vmatpush1.bf16.xpose.msra.mxu1 %v1322_v29 }
  0xba   : > { %1325 = vmatprep.subr.bf16.mxu0 %v1324_v30  ;;  %1352 = vmatprep.subr.bf16.mxu1 %v1324_v30 }
  0xc1   : > { %1327 = vmatpush1.bf16.xpose.msra.mxu0 %v1326_v35  ;;  %1368 = vmatpush1.bf16.xpose.msra.mxu1 %v1326_v35 }
  0xc2   : > { %1329 = vmatprep.subr.bf16.mxu0 %v1328_v36  ;;  %1353 = vmatprep.subr.bf16.mxu1 %v1328_v36 }
  0xc9   : > { %1331 = vmatpush1.bf16.xpose.msra.mxu0 %v1330_v41  ;;  %1369 = vmatpush1.bf16.xpose.msra.mxu1 %v1330_v41 }
  0xca   : > { %1333 = vmatprep.subr.bf16.mxu0 %v1332_v42  ;;  %1354 = vmatprep.subr.bf16.mxu1 %v1332_v42  ;;  %v660_v42 = vsub.s32 0, %v659_v39 }
  0xd1   : > { %1335 = vmatpush1.bf16.xpose.msra.mxu0 %v1334_v47  ;;  %1370 = vmatpush1.bf16.xpose.msra.mxu1 %v1334_v47  ;;  %v661_v47 = vrot.slane %v576_v44, %v660_v42 }
  0xd2   : > { %1337 = vmatprep.subr.bf16.mxu0 %v1336_v48  ;;  %1355 = vmatprep.subr.bf16.mxu1 %v1336_v48  ;;  %v665_v48 = vrot.slane %v576_v44, %v664_v43 }
  0xd9   : > { %1339 = vmatpush1.bf16.xpose.msra.mxu0 %v1338_v51  ;;  %1371 = vmatpush1.bf16.xpose.msra.mxu1 %v1338_v51  ;;  %v839_v51 = vrot.slane %v576_v44, %v838_v45 }
  0xe0   : > { %464 = vmatmul.mubr.f32.vlgmr.msra.gmra.mrb[0].mxu0 %v303_v52  ;;  %512 = vmatmul.mubr.f32.vlgmr.msra.gmra.mrb[0].mxu1 %v319_v53  ;;  %v671_v52 = vrot.slane %v661_v47, %v660_v42  ;;  %v675_v53 = vrot.slane %v665_v48, %v660_v42 }
  0xe1   : > { %469 = vmatprep.mubr.f32.mxu0 %v306_v54  ;;  %517 = vmatprep.mubr.f32.mxu1 %v322_v55  ;;  %v843_v54 = vrot.slane %v576_v44, %v842_v49 }
  0xe4   : > { %470 = vmatmul.mubr.f32.gmra.mrb[2].mxu0 %v305_v56  ;;  %518 = vmatmul.mubr.f32.gmra.mrb[2].mxu1 %v321_v57  ;;  %v2000_v56 = vrot.slane %v839_v51, %v838_v45 }
  0xe5   : > { %475 = vmatprep.mubr.f32.mxu0 %v308_v58  ;;  %523 = vmatprep.mubr.f32.mxu1 %v324_v59  ;;  %v590_v18 = vpop.permute.xlu1 %589  ;;  %v580_v19 = vpop.permute.xlu0 %579 }
  0xe6   : > { %v2002_v58 = vadd.f32 %v671_v52, %v590_v18  ;;  %v2004_v59 = vadd.f32 %v675_v53, %v590_v18 }
  0xe8   : > { %476 = vmatmul.mubr.f32.gmra.mrb[4].mxu0 %v307_v60  ;;  %524 = vmatmul.mubr.f32.gmra.mrb[4].mxu1 %v323_v61  ;;  %v2006_v60 = vadd.f32 %v671_v52, %v580_v19  ;;  %v2008_v61 = vrot.slane %v843_v54, %v838_v45 }
  0xe9   : > { %481 = vmatprep.mubr.f32.mxu0 %v310_v62  ;;  %529 = vmatprep.mubr.f32.mxu1 %v326_v63  ;;  %v2010_v62 = vadd.f32 %v675_v53, %v580_v19 }
  0xea   : > { %v595_v20 = vpop.permute.xlu1 %594  ;;  %v585_v21 = vpop.permute.xlu0 %584  ;;  %2542 = vst [vmem:[#allocation11_spill] sm:$0xff] %v2008_v61 }
  0xeb   : > { %v2012_v63 = vadd.f32 %v671_v52, %v595_v20 }
  0xec   : > { %482 = vmatmul.mubr.f32.gmra.mrb[6].mxu0 %v309_v0  ;;  %530 = vmatmul.mubr.f32.gmra.mrb[6].mxu1 %v325_v1  ;;  %v2014_v0 = vadd.f32 %v675_v53, %v595_v20  ;;  %v2016_v1 = vadd.f32 %v671_v52, %v585_v21 }
  0xed   : > { %487 = vmatprep.mubr.f32.mxu0 %v312_v2  ;;  %535 = vmatprep.mubr.f32.mxu1 %v328_v3  ;;  %v2018_v2 = vadd.f32 %v675_v53, %v585_v21 }
  0xee   : > { %v605_v22 = vpop.permute.xlu1 %604  ;;  %v600_v23 = vpop.permute.xlu0 %599 }
  0xef   : > { %v2020_v3 = vadd.f32 %v671_v52, %v605_v22 }
  0xf0   : > { %488 = vmatmul.mubr.f32.gmra.mrb[8].mxu0 %v311_v4  ;;  %536 = vmatmul.mubr.f32.gmra.mrb[8].mxu1 %v327_v5  ;;  %v2022_v4 = vadd.f32 %v675_v53, %v605_v22  ;;  %v2024_v5 = vadd.f32 %v671_v52, %v600_v23 }
  0xf1   : > { %493 = vmatprep.mubr.f32.mxu0 %v314_v6  ;;  %541 = vmatprep.mubr.f32.mxu1 %v330_v7  ;;  %v2026_v6 = vadd.f32 %v675_v53, %v600_v23 }
  0xf2   : > { %v615_v24 = vpop.permute.xlu1 %614  ;;  %v610_v25 = vpop.permute.xlu0 %609  ;;  %2543 = vst [vmem:[#allocation12_spill] sm:$0xff] %v2022_v4 }
  0xf3   : > { %v2028_v7 = vadd.f32 %v671_v52, %v615_v24 }
  0xf4   : > { %494 = vmatmul.mubr.f32.gmra.mrb[10].mxu0 %v313_v8  ;;  %542 = vmatmul.mubr.f32.gmra.mrb[10].mxu1 %v329_v9  ;;  %v2030_v8 = vadd.f32 %v675_v53, %v615_v24  ;;  %v2032_v9 = vadd.f32 %v671_v52, %v610_v25 }
  0xf5   : > { %499 = vmatprep.mubr.f32.mxu0 %v316_v10  ;;  %547 = vmatprep.mubr.f32.mxu1 %v332_v11  ;;  %2544 = vst [vmem:[#allocation13_spill] sm:$0xff] %v2028_v7  ;;  %v2034_v11 = vadd.f32 %v675_v53, %v610_v25 }
  0xf6   : > { %v625_v26 = vpop.permute.xlu1 %624  ;;  %v620_v27 = vpop.permute.xlu0 %619  ;;  %2545 = vst [vmem:[#allocation14_spill] sm:$0xff] %v2030_v8  ;;  %2546 = vst [vmem:[#allocation15_spill] sm:$0xff] %v2032_v9 }
  0xf7   : > { %2547 = vst [vmem:[#allocation16_spill] sm:$0xff] %v2034_v11 }
  0xf8   : > { %500 = vmatmul.mubr.f32.gmra.mrb[12].mxu0 %v315_v12  ;;  %548 = vmatmul.mubr.f32.gmra.mrb[12].mxu1 %v331_v13  ;;  %v2036_v12 = vadd.f32 %v671_v52, %v625_v26  ;;  %v2038_v13 = vadd.f32 %v675_v53, %v625_v26 }
  0xf9   : > { %505 = vmatprep.mubr.f32.mxu0 %v318_v14  ;;  %553 = vmatprep.mubr.f32.mxu1 %v334_v15  ;;  %v692_v14 = vadd.f32 %v671_v52, %v620_v27  ;;  %v2040_v15 = vadd.f32 %v675_v53, %v620_v27 }
  0xfa   : > { %v635_v28 = vpop.permute.xlu1 %634  ;;  %v630_v29 = vpop.permute.xlu0 %629 }
  0xfb   : > { %v2046_v18 = vadd.f32 %v671_v52, %v630_v29  ;;  %v2048_v20 = vadd.f32 %v675_v53, %v630_v29 }
  0xfc   : > { %506 = vmatmul.mubr.f32.gmra.mrb[14].mxu0 %v317_v16  ;;  %554 = vmatmul.mubr.f32.gmra.mrb[14].mxu1 %v333_v17  ;;  %v2042_v16 = vadd.f32 %v671_v52, %v635_v28  ;;  %v2044_v17 = vadd.f32 %v675_v53, %v635_v28 }
  0xfe   : > { %v645_v30 = vpop.permute.xlu1 %644  ;;  %v640_v31 = vpop.permute.xlu0 %639 }
  0xff   : > { %v2050_v21 = vadd.f32 %v671_v52, %v645_v30  ;;  %v2052_v22 = vadd.f32 %v675_v53, %v645_v30  ;;  %v2054_v23 = vadd.f32 %v671_v52, %v640_v31  ;;  %v2056_v24 = vadd.f32 %v675_v53, %v640_v31 }
 0x101   : > { %2548 = vst [vmem:[#allocation17_spill] sm:$0xff] %v2050_v21  ;;  %2549 = vst [vmem:[#allocation18_spill] sm:$0xff] %v2052_v22 }
 0x102   : > { %v655_v32 = vpop.permute.xlu1 %654  ;;  %v650_v33 = vpop.permute.xlu0 %649 }
 0x103   : > { %v2058_v25 = vadd.f32 %v671_v52, %v655_v32  ;;  %v2060_v26 = vadd.f32 %v675_v53, %v655_v32  ;;  %v2062_v27 = vadd.f32 %v671_v52, %v650_v33  ;;  %v2064_v28 = vadd.f32 %v675_v53, %v650_v33 }
 0x105   : > { %2550 = vst [vmem:[#allocation19_spill] sm:$0xff] %v2058_v25  ;;  %2551 = vst [vmem:[#allocation20_spill] sm:$0xff] %v2060_v26 }
 0x106   : > { %2552 = vst [vmem:[#allocation21_spill] sm:$0xff] %v2062_v27  ;;  %2553 = vst [vmem:[#allocation22_spill] sm:$0xff] %v2064_v28 }
 0x107   : > { %v778_v34 = vpop.permute.xlu1 %777  ;;  %v774_v35 = vpop.permute.xlu0 %773 }
 0x108   : > { %v2067_v37 = vmul.f32 %v2000_v56, %v778_v34  ;;  %v2070_v29 = vmul.f32 %v2008_v61, %v778_v34  ;;  %v2073_v30 = vmul.f32 %v2000_v56, %v774_v35  ;;  %v2076_v31 = vmul.f32 %v2008_v61, %v774_v35 }
 0x10b   : > { %v782_v36 = vpop.permute.xlu1 %781  ;;  %v1991_v38 = vpop.permute.xlu0 %785 }
 0x10c   : > { %v2079_v39 = vmul.f32 %v2000_v56, %v782_v36  ;;  %v2082_v32 = vmul.f32 %v2008_v61, %v782_v36  ;;  %v2086_v33 = vmul.f32 %v2000_v56, %v1991_v38  ;;  %v2090_v34 = vmul.f32 %v2008_v61, %v1991_v38 }
 0x10f   : > { %v1993_v40 = vpop.permute.xlu1 %789  ;;  %v1995_v41 = vpop.permute.xlu0 %793 }
 0x110   : > { %v2094_v43 = vmul.f32 %v2000_v56, %v1993_v40  ;;  %v2098_v35 = vmul.f32 %v2008_v61, %v1993_v40  ;;  %v2102_v36 = vmul.f32 %v2000_v56, %v1995_v41  ;;  %v2106_v44 = vmul.f32 %v2008_v61, %v1995_v41 }
 0x112   : > { %2554 = vst [vmem:[#allocation23_spill] sm:$0xff] %v2102_v36  ;;  %2555 = vst [vmem:[#allocation24_spill] sm:$0xff] %v2106_v44 }
 0x113   : > { %v798_v46 = vpop.permute.xlu1 %797  ;;  %v802_v50 = vpop.permute.xlu0 %801 }
 0x114   : > { %v2109_v45 = vmul.f32 %v2000_v56, %v798_v46  ;;  %v2112_v38 = vmul.f32 %v2008_v61, %v798_v46  ;;  %v2115_v47 = vmul.f32 %v2000_v56, %v802_v50  ;;  %v2118_v40 = vmul.f32 %v2008_v61, %v802_v50 }
 0x116   : > { %2556 = vst [vmem:[#allocation25_spill] sm:$0xff] %v2109_v45  ;;  %2557 = vst [vmem:[#allocation26_spill] sm:$0xff] %v2112_v38 }
 0x117   : > { %v806_v55 = vpop.permute.xlu1 %805  ;;  %v810_v57 = vpop.permute.xlu0 %809  ;;  %2558 = vst [vmem:[#allocation27_spill] sm:$0xff] %v2115_v47  ;;  %2559 = vst [vmem:[#allocation28_spill] sm:$0xff] %v2118_v40 }
 0x118   : > { %v2121_v49 = vmul.f32 %v2000_v56, %v806_v55  ;;  %v2124_v51 = vmul.f32 %v2008_v61, %v806_v55  ;;  %v2127_v41 = vmul.f32 %v2000_v56, %v810_v57  ;;  %v2130_v46 = vmul.f32 %v2008_v61, %v810_v57 }
 0x11b   : > { %v814_v10 = vpop.permute.xlu1 %813  ;;  %v818_v19 = vpop.permute.xlu0 %817 }
 0x11c   : > { %v2133_v54 = vmul.f32 %v2000_v56, %v814_v10  ;;  %v2136_v25 = vmul.f32 %v2008_v61, %v814_v10  ;;  %v2139_v55 = vmul.f32 %v2000_v56, %v818_v19  ;;  %v2142_v38 = vmul.f32 %v2008_v61, %v818_v19 }
 0x11e   : > { %2560 = vst [vmem:[#allocation29_spill] sm:$0xff] %v2142_v38 }
 0x11f   : > { %v822_v42 = vpop.permute.xlu1 %821  ;;  %v826_v48 = vpop.permute.xlu0 %825 }
 0x120   : > { %v2145_v57 = vmul.f32 %v2000_v56, %v822_v42  ;;  %v2149_v11 = vmul.f32 %v2008_v61, %v822_v42  ;;  %v2152_v10 = vmul.f32 %v2000_v56, %v826_v48 }
 0x122   : > { %2561 = vst [vmem:[#allocation30_spill] sm:$0xff] %v2149_v11  ;;  %2562 = vst [vmem:[#allocation31_spill] sm:$0xff] %v2152_v10 }
 0x1b3   : > { %v465_v52 = vpop.f32.mrb[0].mxu0  ;;  %v513_v53 = vpop.f32.mrb[0].mxu1 }
 0x1b4   : > { %v708_v26 = vmul.f32 2.0, %v465_v52  ;;  %v724_v50 = vmul.f32 2.0, %v513_v53  ;;  %v467_v40 = vpop.f32.mrb[1].mxu0  ;;  %v515_v8 = vpop.f32.mrb[1].mxu1 }
 0x1b5   : > { %v709_v47 = vmul.f32 2.0, %v467_v40  ;;  %v725_v7 = vmul.f32 2.0, %v515_v8  ;;  %v830_v53 = vpop.permute.xlu1 %829 }
 0x1b6   : > { %v740_v28 = vsub.f32 %v2006_v60, %v708_v26  ;;  %v756_v52 = vsub.f32 %v692_v14, %v724_v50 }
 0x1b7   : > { %v741_v45 = vsub.f32 %v2010_v62, %v709_v47  ;;  %v757_v8 = vsub.f32 %v2040_v15, %v725_v7  ;;  %v471_v40 = vpop.f32.mrb[2].mxu0  ;;  %v519_v19 = vpop.f32.mrb[2].mxu1  ;;  %v2169_v15 = vmul.f32 %v2008_v61, %v826_v48 }
 0x1b8   : > { %v2157_v27 = vadd.f32 %v2073_v30, %v740_v28  ;;  %v2160_v9 = vadd.f32 %v2121_v49, %v756_v52  ;;  %v710_v60 = vmul.f32 2.0, %v471_v40  ;;  %v726_v14 = vmul.f32 2.0, %v519_v19  ;;  %v473_v26 = vpop.f32.mrb[3].mxu0  ;;  %v521_v42 = vpop.f32.mrb[3].mxu1 }
 0x1b9   : > { %v2163_v50 = vadd.f32 %v2076_v31, %v741_v45  ;;  %v2166_v44 = vadd.f32 %v2124_v51, %v757_v8  ;;  %v711_v62 = vmul.f32 2.0, %v473_v26  ;;  %v727_v7 = vmul.f32 2.0, %v521_v42  ;;  %2563 = vst [vmem:[#allocation32_spill] sm:$0xff] %v2169_v15  ;;  %v2172_v28 = vpop.permute.xlu0 %833 }
 0x1ba   : > { %1455 = vrcp.f32 %v2157_v27  ;;  %2564 = vst [vmem:[#allocation33_spill] sm:$0xff] %v2172_v28  ;;  %v742_v47 = vsub.f32 %v2016_v1, %v710_v60  ;;  %v758_v52 = vsub.f32 %v2036_v12, %v726_v14  ;;  %v2178_v45 = vmul.f32 %v2000_v56, %v830_v53 }
 0x1bb   : > { %1457 = vrcp.f32 %v2160_v9  ;;  %v743_v8 = vsub.f32 %v2018_v2, %v711_v62  ;;  %v759_v40 = vsub.f32 %v2038_v13, %v727_v7  ;;  %v477_v19 = vpop.f32.mrb[4].mxu0  ;;  %v525_v48 = vpop.f32.mrb[4].mxu1 }
 0x1bc   : > { %2565 = vst [vmem:[#allocation34_spill] sm:$0xff] %v2178_v45  ;;  %1459 = vrcp.f32 %v2163_v50  ;;  %v2184_v26 = vadd.f32 %v2067_v37, %v742_v47  ;;  %v2187_v1 = vadd.f32 %v2127_v41, %v758_v52  ;;  %v712_v12 = vmul.f32 2.0, %v477_v19  ;;  %v479_v60 = vpop.f32.mrb[5].mxu0  ;;  %v527_v14 = vpop.f32.mrb[5].mxu1 }
 0x1bd   : > { %1461 = vrcp.f32 %v2166_v44  ;;  %v2191_v42 = vadd.f32 %v2070_v29, %v743_v8  ;;  %v2194_v2 = vadd.f32 %v2130_v46, %v759_v40  ;;  %v728_v13 = vmul.f32 2.0, %v525_v48 }
 0x1be   : > { %1463 = vrcp.f32 %v2184_v26  ;;  %v744_v62 = vsub.f32 %v2002_v58, %v712_v12  ;;  %v713_v7 = vmul.f32 2.0, %v479_v60  ;;  %v729_v47 = vmul.f32 2.0, %v527_v14 }
 0x1bf   : > { %v2199_v52 = vmul.f32 %v2008_v61, %v830_v53  ;;  %v2203_v19 = vmul.f32 %v2000_v56, %v2172_v28  ;;  %1465 = vrcp.f32 %v2187_v1  ;;  %v760_v8 = vsub.f32 %v2046_v18, %v728_v13  ;;  %v483_v40 = vpop.f32.mrb[6].mxu0  ;;  %v531_v45 = vpop.f32.mrb[6].mxu1 }
 0x1c0   : > { %1467 = vrcp.f32 %v2191_v42  ;;  %v2209_v48 = vadd.f32 %v2079_v39, %v744_v62  ;;  %v745_v58 = vsub.f32 %v2004_v59, %v713_v7  ;;  %v761_v53 = vsub.f32 %v2048_v20, %v729_v47  ;;  %v485_v12 = vpop.f32.mrb[7].mxu0  ;;  %v533_v60 = vpop.f32.mrb[7].mxu1 }
 0x1c1   : > { %2566 = vst [vmem:[#allocation35_spill] sm:$0xff] %v2199_v52  ;;  %2567 = vst [vmem:[#allocation36_spill] sm:$0xff] %v2203_v19  ;;  %1469 = vrcp.f32 %v2194_v2  ;;  %v2215_v56 = vadd.f32 %v2133_v54, %v760_v8  ;;  %v714_v14 = vmul.f32 2.0, %v483_v40  ;;  %v730_v18 = vmul.f32 2.0, %v531_v45 }
 0x1c2   : > { %1471 = vrcp.f32 %v2209_v48  ;;  %v2219_v13 = vadd.f32 %v2082_v32, %v745_v58  ;;  %v2222_v62 = vadd.f32 %v2136_v25, %v761_v53  ;;  %v715_v59 = vmul.f32 2.0, %v485_v12 }
 0x1c3   : > { %1473 = vrcp.f32 %v2215_v56  ;;  %v746_v20 = vsub.f32 %v2012_v63, %v714_v14  ;;  %v762_v7 = vsub.f32 %v2042_v16, %v730_v18  ;;  %v731_v47 = vmul.f32 2.0, %v533_v60  ;;  %v489_v8 = vpop.f32.mrb[8].mxu0  ;;  %v537_v19 = vpop.f32.mrb[8].mxu1 }
 0x1c4   : > { %v1456_v40 = vpop.eup %1455  ;;  %1475 = vrcp.f32 %v2219_v13  ;;  %v747_v45 = vsub.f32 %v2014_v0, %v715_v59  ;;  %v2229_v58 = vmul.f32 2.0, %v489_v8  ;;  %v2231_v61 = vmul.f32 2.0, %v537_v19  ;;  %v2233_v53 = vpop.f32.mrb[9].mxu0 }
 0x1c5   : > { %v2235_v12 = vpop.f32.mrb[9].mxu1  ;;  %v1458_v28 = vpop.eup %1457  ;;  %v950_v63 = vmul.f32 %v1456_v40, %v2157_v27  ;;  %1477 = vrcp.f32 %v2222_v62  ;;  %v2240_v16 = vadd.f32 %v2086_v33, %v746_v20  ;;  %v2243_v60 = vadd.f32 %v2139_v55, %v762_v7 }
 0x1c6   : > { %v1460_v0 = vpop.eup %1459  ;;  %v966_v14 = vmul.f32 %v1458_v28, %v2160_v9  ;;  %v2247_v19 = vadd.f32 %v2090_v34, %v747_v45  ;;  %v763_v18 = vsub.f32 %v2044_v17, %v731_v47 }
 0x1c7   : > { %v1462_v27 = vpop.eup %1461  ;;  %v982_v8 = vsub.f32 2.0, %v950_v63  ;;  %v951_v52 = vmul.f32 %v1460_v0, %v2163_v50  ;;  %1479 = vrcp.f32 %v2240_v16  ;;  %v2256_v7 = vpop.f32.mrb[10].mxu0 }
 0x1c8   : > { %v2258_v9 = vpop.f32.mrb[10].mxu1  ;;  %v1464_v45 = vpop.eup %1463  ;;  %v998_v15 = vsub.f32 2.0, %v966_v14  ;;  %v967_v17 = vmul.f32 %v1462_v27, %v2166_v44  ;;  %1481 = vrcp.f32 %v2243_v60  ;;  %v2263_v47 = vadd.f32 %v2142_v38, %v763_v18 }
 0x1c9   : > { %v2265_v63 = vpop.f32.mrb[11].mxu0  ;;  %v2267_v50 = vpop.f32.mrb[11].mxu1  ;;  %v1014_v22 = vmul.f32 %v1456_v40, %v982_v8  ;;  %v983_v20 = vsub.f32 2.0, %v951_v52  ;;  %v952_v10 = vmul.f32 %v1464_v45, %v2184_v26  ;;  %1483 = vrcp.f32 %v2247_v19 }
 0x1ca   : > { %2568 = vst [vmem:[#allocation37_spill] sm:$0xff] %v2265_v63  ;;  %2569 = vst [vmem:[#allocation38_spill] sm:$0xff] %v2267_v50  ;;  %v1466_v59 = vpop.eup %1465  ;;  %v1030_v14 = vmul.f32 %v1458_v28, %v998_v15  ;;  %v999_v36 = vsub.f32 2.0, %v967_v17  ;;  %1485 = vrcp.f32 %v2263_v47 }
 0x1cb   : > { %v1468_v4 = vpop.eup %1467  ;;  %v968_v44 = vmul.f32 %v1466_v59, %v2187_v1  ;;  %v1046_v21 = vmul.f32 %v1014_v22, %v2073_v30  ;;  %v1015_v11 = vmul.f32 %v1460_v0, %v983_v20  ;;  %v984_v50 = vsub.f32 2.0, %v952_v10  ;;  %v2275_v52 = vpop.f32.mrb[12].mxu0 }
 0x1cc   : > { %v1470_v18 = vpop.eup %1469  ;;  %v953_v40 = vmul.f32 %v1468_v4, %v2191_v42  ;;  %v2277_v26 = vpop.f32.mrb[12].mxu1  ;;  %v1062_v15 = vmul.f32 %v1030_v14, %v2121_v49  ;;  %v1031_v28 = vmul.f32 %v1462_v27, %v999_v36 }
 0x1cd   : > { %v1472_v8 = vpop.eup %1471  ;;  %v1000_v17 = vsub.f32 2.0, %v968_v44  ;;  %v969_v1 = vmul.f32 %v1470_v18, %v2194_v2  ;;  %v2281_v38 = vpop.f32.mrb[13].mxu0  ;;  %1078 = vst [vmem:[%s2287_s6] sm:$0xff] %v1046_v21  ;;  %v1047_v30 = vmul.f32 %v1015_v11, %v2076_v31  ;;  %v1016_v10 = vmul.f32 %v1464_v45, %v984_v50 }
 0x1ce   : > { %v2283_v63 = vpop.f32.mrb[13].mxu1  ;;  %v1474_v22 = vpop.eup %1473  ;;  %v985_v49 = vsub.f32 2.0, %v953_v40  ;;  %v954_v36 = vmul.f32 %v1472_v8, %v2209_v48  ;;  %1094 = vst [vmem:[%s2287_s6 + $0x80] sm:$0xff] %v1062_v15  ;;  %v1063_v2 = vmul.f32 %v1031_v28, %v2124_v51 }
 0x1cf   : > { %v1476_v42 = vpop.eup %1475  ;;  %v1032_v0 = vmul.f32 %v1466_v59, %v1000_v17  ;;  %v1001_v27 = vsub.f32 2.0, %v969_v1  ;;  %v970_v20 = vmul.f32 %v1474_v22, %v2215_v56  ;;  %1079 = vst [vmem:[%s2287_s6 + $0x8] sm:$0xff] %v1047_v30  ;;  %v1048_v21 = vmul.f32 %v1016_v10, %v2067_v37  ;;  %v2298_v45 = vpop.f32.mrb[14].mxu0 }
 0x1d0   : > { %v1478_v14 = vpop.eup %1477  ;;  %v1017_v44 = vmul.f32 %v1468_v4, %v985_v49  ;;  %v986_v11 = vsub.f32 2.0, %v954_v36  ;;  %v955_v31 = vmul.f32 %v1476_v42, %v2219_v13  ;;  %v2300_v48 = vpop.f32.mrb[14].mxu1  ;;  %1095 = vst [vmem:[%s2287_s6 + $0x88] sm:$0xff] %v1063_v2  ;;  %v2570_v17 = vsub.f32 %v2024_v5, %v2229_v58 }
 0x1d1   : > { %v1064_v51 = vmul.f32 %v1032_v0, %v2127_v41  ;;  %v1033_v59 = vmul.f32 %v1470_v18, %v1001_v27  ;;  %v1002_v50 = vsub.f32 2.0, %v970_v20  ;;  %v971_v56 = vmul.f32 %v1478_v14, %v2222_v62  ;;  %v2305_v40 = vpop.f32.mrb[15].mxu0  ;;  %v2307_v37 = vpop.f32.mrb[15].mxu1  ;;  %1080 = vst [vmem:[%s2287_s6 + $0x10] sm:$0xff] %v1048_v21 }
 0x1d2   : > { %v1480_v4 = vpop.eup %1479  ;;  %v1049_v13 = vmul.f32 %v1017_v44, %v2070_v29  ;;  %v1018_v15 = vmul.f32 %v1472_v8, %v986_v11  ;;  %v987_v28 = vsub.f32 2.0, %v955_v31  ;;  %v2315_v41 = vadd.f32 %v2094_v43, %v2570_v17 }
 0x1d3   : > { %v1482_v18 = vpop.eup %1481  ;;  %1096 = vst [vmem:[%s2287_s6 + $0x90] sm:$0xff] %v1064_v51  ;;  %v1065_v62 = vmul.f32 %v1033_v59, %v2130_v46  ;;  %v1034_v1 = vmul.f32 %v1474_v22, %v1002_v50  ;;  %v1003_v30 = vsub.f32 2.0, %v971_v56  ;;  %v956_v10 = vmul.f32 %v1480_v4, %v2240_v16  ;;  %v2572_v59 = vld [vmem:[#allocation37_spill] sm:$0xff]  ;;  %v2574_v56 = vld [vmem:[#allocation30_spill] sm:$0xff] }
 0x1d4   : > { %v1484_v49 = vpop.eup %1483  ;;  %1081 = vst [vmem:[%s2287_s6 + $0x18] sm:$0xff] %v1049_v13  ;;  %v1050_v29 = vmul.f32 %v1018_v15, %v2079_v39  ;;  %v1019_v8 = vmul.f32 %v1476_v42, %v987_v28  ;;  %v972_v5 = vmul.f32 %v1482_v18, %v2243_v60  ;;  %1487 = vrcp.f32 %v2315_v41  ;;  %v2573_v50 = vld [vmem:[#allocation29_spill] sm:$0xff] }
 0x1d5   : > { %v1486_v58 = vpop.eup %1485  ;;  %1097 = vst [vmem:[%s2287_s6 + $0x98] sm:$0xff] %v1065_v62  ;;  %v1066_v46 = vmul.f32 %v1034_v1, %v2133_v54  ;;  %v1035_v36 = vmul.f32 %v1478_v14, %v1003_v30  ;;  %v988_v22 = vsub.f32 2.0, %v956_v10  ;;  %v957_v2 = vmul.f32 %v1484_v49, %v2247_v19  ;;  %v2579_v62 = vld [vmem:[#allocation31_spill] sm:$0xff]  ;;  %v2580_v30 = vld [vmem:[#allocation18_spill] sm:$0xff] }
 0x1d6   : > { %1082 = vst [vmem:[%s2287_s6 + $0x20] sm:$0xff] %v1050_v29  ;;  %v1051_v16 = vmul.f32 %v1019_v8, %v2082_v32  ;;  %v1004_v0 = vsub.f32 2.0, %v972_v5  ;;  %v973_v39 = vmul.f32 %v1486_v58, %v2263_v47  ;;  %v2571_v60 = vsub.f32 %v2054_v23, %v2231_v61  ;;  %v2581_v8 = vld [vmem:[#allocation24_spill] sm:$0xff] }
 0x1d7   : > { %1098 = vst [vmem:[%s2287_s6 + $0xa0] sm:$0xff] %v1066_v46  ;;  %v1067_v27 = vmul.f32 %v1035_v36, %v2136_v25  ;;  %v1020_v54 = vmul.f32 %v1480_v4, %v988_v22  ;;  %v989_v20 = vsub.f32 2.0, %v957_v2  ;;  %v717_v19 = vmul.f32 2.0, %v2233_v53  ;;  %v2575_v4 = vld [vmem:[#allocation17_spill] sm:$0xff]  ;;  %v2583_v36 = vld [vmem:[#allocation32_spill] sm:$0xff] }
 0x1d8   : > { %v910_v42 = vadd.f32 %v2145_v57, %v2571_v60  ;;  %1083 = vst [vmem:[%s2287_s6 + $0x28] sm:$0xff] %v1051_v16  ;;  %v1036_v14 = vmul.f32 %v1482_v18, %v1004_v0  ;;  %v1005_v21 = vsub.f32 2.0, %v973_v39  ;;  %v733_v32 = vmul.f32 2.0, %v2235_v12  ;;  %v2585_v39 = vld [vmem:[#allocation25_spill] sm:$0xff] }
 0x1d9   : > { %1099 = vst [vmem:[%s2287_s6 + $0xa8] sm:$0xff] %v1067_v27  ;;  %v1052_v61 = vmul.f32 %v1020_v54, %v2086_v33  ;;  %v1021_v23 = vmul.f32 %v1484_v49, %v989_v20  ;;  %v749_v47 = vsub.f32 %v2026_v6, %v717_v19  ;;  %v718_v25 = vmul.f32 2.0, %v2256_v7  ;;  %v2587_v20 = vld [vmem:[#allocation16_spill] sm:$0xff] }
 0x1da   : > { %1489 = vrcp.f32 %v910_v42  ;;  %v1068_v44 = vmul.f32 %v1036_v14, %v2139_v55  ;;  %v1037_v11 = vmul.f32 %v1486_v58, %v1005_v21  ;;  %v765_v53 = vsub.f32 %v2056_v24, %v733_v32  ;;  %v2576_v24 = vld [vmem:[#allocation38_spill] sm:$0xff]  ;;  %v2582_v58 = vld [vmem:[#allocation15_spill] sm:$0xff] }
 0x1db   : > { %v734_v31 = vmul.f32 2.0, %v2258_v9  ;;  %1084 = vst [vmem:[%s2287_s6 + $0x30] sm:$0xff] %v1052_v61  ;;  %v1053_v12 = vmul.f32 %v1021_v23, %v2090_v34  ;;  %v895_v51 = vadd.f32 %v2098_v35, %v749_v47  ;;  %v750_v33 = vsub.f32 %v2020_v3, %v718_v25  ;;  %v2577_v9 = vld [vmem:[#allocation23_spill] sm:$0xff]  ;;  %v2578_v34 = vld [vmem:[#allocation12_spill] sm:$0xff]  ;;  %v2588_v61 = vld [vmem:[#allocation22_spill] sm:$0xff] }
 0x1dc   : > { %v719_v6 = vmul.f32 2.0, %v2572_v59  ;;  %1100 = vst [vmem:[%s2287_s6 + $0xb0] sm:$0xff] %v1068_v44  ;;  %v1069_v7 = vmul.f32 %v1037_v11, %v2573_v50  ;;  %v911_v55 = vadd.f32 %v2574_v56, %v765_v53  ;;  %v735_v15 = vmul.f32 2.0, %v2576_v24  ;;  %v2589_v23 = vld [vmem:[#allocation26_spill] sm:$0xff]  ;;  %v2590_v25 = vld [vmem:[#allocation13_spill] sm:$0xff]  ;;  %v2593_v59 = vld [vmem:[#allocation19_spill] sm:$0xff] }
 0x1dd   : > { %v766_v13 = vsub.f32 %v2575_v4, %v734_v31  ;;  %1085 = vst [vmem:[%s2287_s6 + $0x38] sm:$0xff] %v1053_v12  ;;  %1491 = vrcp.f32 %v895_v51  ;;  %v896_v28 = vadd.f32 %v2577_v9, %v750_v33  ;;  %v720_v18 = vmul.f32 2.0, %v2275_v52  ;;  %v2584_v52 = vld [vmem:[#allocation21_spill] sm:$0xff]  ;;  %v2591_v31 = vld [vmem:[#allocation35_spill] sm:$0xff]  ;;  %v2596_v24 = vld [vmem:[#allocation14_spill] sm:$0xff] }
 0x1de   : > { %v751_v17 = vsub.f32 %v2578_v34, %v719_v6  ;;  %v1488_v3 = vpop.eup %1487  ;;  %1101 = vst [vmem:[%s2287_s6 + $0xb8] sm:$0xff] %v1069_v7  ;;  %1493 = vrcp.f32 %v911_v55  ;;  %v767_v10 = vsub.f32 %v2580_v30, %v735_v15  ;;  %v736_v49 = vmul.f32 2.0, %v2277_v26  ;;  %v2594_v4 = vld [vmem:[#allocation33_spill] sm:$0xff] }
 0x1df   : > { %v912_v1 = vadd.f32 %v2579_v62, %v766_v13  ;;  %v958_v29 = vmul.f32 %v1488_v3, %v2315_v41  ;;  %1495 = vrcp.f32 %v896_v28  ;;  %v752_v46 = vsub.f32 %v2582_v58, %v720_v18  ;;  %v2586_v41 = vld [vmem:[#allocation34_spill] sm:$0xff] }
 0x1e0   : > { %v897_v5 = vadd.f32 %v2581_v8, %v751_v17  ;;  %v913_v22 = vadd.f32 %v2583_v36, %v767_v10  ;;  %v768_v2 = vsub.f32 %v2584_v52, %v736_v49  ;;  %v721_v16 = vmul.f32 2.0, %v2281_v38  ;;  %v2597_v17 = vld [vmem:[#allocation36_spill] sm:$0xff] }
 0x1e1   : > { %1497 = vrcp.f32 %v912_v1  ;;  %v990_v0 = vsub.f32 2.0, %v958_v29  ;;  %v898_v60 = vadd.f32 %v2585_v39, %v752_v46  ;;  %v737_v26 = vmul.f32 2.0, %v2283_v63  ;;  %v2599_v29 = vld [vmem:[#allocation28_spill] sm:$0xff] }
 0x1e2   : > { %1499 = vrcp.f32 %v897_v5  ;;  %v914_v54 = vadd.f32 %v2586_v41, %v768_v2  ;;  %v753_v19 = vsub.f32 %v2587_v20, %v721_v16  ;;  %v722_v14 = vmul.f32 2.0, %v2298_v45 }
 0x1e3   : > { %1501 = vrcp.f32 %v913_v22  ;;  %v1022_v21 = vmul.f32 %v1488_v3, %v990_v0  ;;  %v769_v38 = vsub.f32 %v2588_v61, %v737_v26  ;;  %v738_v44 = vmul.f32 2.0, %v2300_v48  ;;  %v2595_v48 = vld [vmem:[#allocation11_spill] sm:$0xff] }
 0x1e4   : > { %v1490_v27 = vpop.eup %1489  ;;  %1503 = vrcp.f32 %v898_v60  ;;  %v2377_v47 = vadd.f32 %v2589_v23, %v753_v19  ;;  %v754_v63 = vsub.f32 %v2590_v25, %v722_v14  ;;  %v723_v45 = vmul.f32 2.0, %v2305_v40 }
 0x1e5   : > { %v974_v32 = vmul.f32 %v1490_v27, %v910_v42  ;;  %1505 = vrcp.f32 %v914_v54  ;;  %v1054_v11 = vmul.f32 %v1022_v21, %v2094_v43  ;;  %v2383_v12 = vadd.f32 %v2591_v31, %v769_v38  ;;  %v2592_v42 = vld [vmem:[#allocation27_spill] sm:$0xff] }
 0x1e6   : > { %1507 = vrcp.f32 %v2377_v47  ;;  %v2388_v33 = vadd.f32 %v2592_v42, %v754_v63  ;;  %v770_v6 = vsub.f32 %v2593_v59, %v738_v44  ;;  %v739_v50 = vmul.f32 2.0, %v2307_v37  ;;  %v2598_v37 = vld [vmem:[#allocation20_spill] sm:$0xff] }
 0x1e7   : > { %v1006_v53 = vsub.f32 2.0, %v974_v32  ;;  %v1492_v7 = vpop.eup %1491  ;;  %v2394_v13 = vmul.f32 %v2595_v48, %v2594_v4  ;;  %1086 = vst [vmem:[%s2287_s6 + $0x40] sm:$0xff] %v1054_v11  ;;  %1509 = vrcp.f32 %v2383_v12  ;;  %v755_v40 = vsub.f32 %v2596_v24, %v723_v45 }
 0x1e8   : > { %v1494_v15 = vpop.eup %1493  ;;  %v959_v34 = vmul.f32 %v1492_v7, %v895_v51  ;;  %1511 = vrcp.f32 %v2388_v33  ;;  %v2401_v18 = vadd.f32 %v2597_v17, %v770_v6  ;;  %v771_v3 = vsub.f32 %v2598_v37, %v739_v50 }
 0x1e9   : > { %v1038_v43 = vmul.f32 %v1490_v27, %v1006_v53  ;;  %v1496_v30 = vpop.eup %1495  ;;  %v975_v49 = vmul.f32 %v1494_v15, %v911_v55  ;;  %v2406_v58 = vadd.f32 %v2599_v29, %v755_v40 }
 0x1ea   : > { %v991_v52 = vsub.f32 2.0, %v959_v34  ;;  %v960_v2 = vmul.f32 %v1496_v30, %v896_v28  ;;  %1513 = vrcp.f32 %v2401_v18  ;;  %v2410_v51 = vadd.f32 %v2394_v13, %v771_v3 }
 0x1eb   : > { %v1070_v10 = vmul.f32 %v1038_v43, %v2145_v57  ;;  %v1498_v46 = vpop.eup %1497  ;;  %v1007_v0 = vsub.f32 2.0, %v975_v49  ;;  %1515 = vrcp.f32 %v2406_v58 }
 0x1ec   : > { %v1500_v16 = vpop.eup %1499  ;;  %v976_v26 = vmul.f32 %v1498_v46, %v912_v1  ;;  %v1023_v57 = vmul.f32 %v1492_v7, %v991_v52  ;;  %v992_v55 = vsub.f32 2.0, %v960_v2  ;;  %1517 = vrcp.f32 %v2410_v51 }
 0x1ed   : > { %1102 = vst [vmem:[%s2287_s6 + $0xc0] sm:$0xff] %v1070_v10  ;;  %v1502_v27 = vpop.eup %1501  ;;  %v961_v20 = vmul.f32 %v1500_v16, %v897_v5  ;;  %v1039_v28 = vmul.f32 %v1494_v15, %v1007_v0 }
 0x1ee   : > { %v1504_v19 = vpop.eup %1503  ;;  %v1008_v14 = vsub.f32 2.0, %v976_v26  ;;  %v977_v21 = vmul.f32 %v1502_v27, %v913_v22  ;;  %v1055_v61 = vmul.f32 %v1023_v57, %v2098_v35  ;;  %v1024_v38 = vmul.f32 %v1496_v30, %v992_v55 }
 0x1ef   : > { %v1506_v32 = vpop.eup %1505  ;;  %v993_v25 = vsub.f32 2.0, %v961_v20  ;;  %v962_v1 = vmul.f32 %v1504_v19, %v898_v60  ;;  %v1071_v63 = vmul.f32 %v1039_v28, %v2574_v56 }
 0x1f0   : > { %v1040_v44 = vmul.f32 %v1498_v46, %v1008_v14  ;;  %v1009_v11 = vsub.f32 2.0, %v977_v21  ;;  %v978_v5 = vmul.f32 %v1506_v32, %v914_v54  ;;  %v1508_v53 = vpop.eup %1507  ;;  %1087 = vst [vmem:[%s2287_s6 + $0x48] sm:$0xff] %v1055_v61  ;;  %v1056_v45 = vmul.f32 %v1024_v38, %v2577_v9 }
 0x1f1   : > { %v1025_v59 = vmul.f32 %v1500_v16, %v993_v25  ;;  %v994_v22 = vsub.f32 2.0, %v962_v1  ;;  %v1510_v6 = vpop.eup %1509  ;;  %1103 = vst [vmem:[%s2287_s6 + $0xc8] sm:$0xff] %v1071_v63  ;;  %v963_v56 = vmul.f32 %v1508_v53, %v2377_v47 }
 0x1f2   : > { %v1072_v35 = vmul.f32 %v1040_v44, %v2579_v62  ;;  %v1041_v50 = vmul.f32 %v1502_v27, %v1009_v11  ;;  %v1010_v60 = vsub.f32 2.0, %v978_v5  ;;  %v1512_v7 = vpop.eup %1511  ;;  %1088 = vst [vmem:[%s2287_s6 + $0x50] sm:$0xff] %v1056_v45  ;;  %v979_v48 = vmul.f32 %v1510_v6, %v2383_v12 }
 0x1f3   : > { %v1057_v54 = vmul.f32 %v1025_v59, %v2581_v8  ;;  %v1026_v4 = vmul.f32 %v1504_v19, %v994_v22  ;;  %v995_v24 = vsub.f32 2.0, %v963_v56  ;;  %v964_v62 = vmul.f32 %v1512_v7, %v2388_v33 }
 0x1f4   : > { %1104 = vst [vmem:[%s2287_s6 + $0xd0] sm:$0xff] %v1072_v35  ;;  %v1073_v9 = vmul.f32 %v1041_v50, %v2583_v36  ;;  %v1042_v43 = vmul.f32 %v1506_v32, %v1010_v60  ;;  %v1514_v40 = vpop.eup %1513  ;;  %v1011_v15 = vsub.f32 2.0, %v979_v48 }
 0x1f5   : > { %1089 = vst [vmem:[%s2287_s6 + $0x58] sm:$0xff] %v1057_v54  ;;  %v1058_v47 = vmul.f32 %v1026_v4, %v2585_v39  ;;  %v1516_v34 = vpop.eup %1515  ;;  %v1027_v12 = vmul.f32 %v1508_v53, %v995_v24  ;;  %v996_v37 = vsub.f32 2.0, %v964_v62  ;;  %v980_v3 = vmul.f32 %v1514_v40, %v2401_v18 }
 0x1f6   : > { %1105 = vst [vmem:[%s2287_s6 + $0xd8] sm:$0xff] %v1073_v9  ;;  %v1074_v8 = vmul.f32 %v1042_v43, %v2586_v41  ;;  %v1518_v36 = vpop.eup %1517  ;;  %v1043_v33 = vmul.f32 %v1510_v6, %v1011_v15  ;;  %v965_v30 = vmul.f32 %v1516_v34, %v2406_v58 }
 0x1f7   : > { %1090 = vst [vmem:[%s2287_s6 + $0x60] sm:$0xff] %v1058_v47  ;;  %v1059_v39 = vmul.f32 %v1027_v12, %v2589_v23  ;;  %v1028_v10 = vmul.f32 %v1512_v7, %v996_v37  ;;  %v1012_v49 = vsub.f32 2.0, %v980_v3  ;;  %v981_v41 = vmul.f32 %v1518_v36, %v2410_v51 }
 0x1f8   : > { %1106 = vst [vmem:[%s2287_s6 + $0xe0] sm:$0xff] %v1074_v8  ;;  %v1075_v46 = vmul.f32 %v1043_v33, %v2591_v31  ;;  %v997_v18 = vsub.f32 2.0, %v965_v30 }
 0x1f9   : > { %1091 = vst [vmem:[%s2287_s6 + $0x68] sm:$0xff] %v1059_v39  ;;  %v1060_v52 = vmul.f32 %v1028_v10, %v2592_v42  ;;  %v1044_v2 = vmul.f32 %v1514_v40, %v1012_v49  ;;  %v1013_v58 = vsub.f32 2.0, %v981_v41 }
 0x1fa   : > { %1107 = vst [vmem:[%s2287_s6 + $0xe8] sm:$0xff] %v1075_v46  ;;  %v1029_v23 = vmul.f32 %v1516_v34, %v997_v18 }
 0x1fb   : > { %1092 = vst [vmem:[%s2287_s6 + $0x70] sm:$0xff] %v1060_v52  ;;  %v1076_v51 = vmul.f32 %v1044_v2, %v2597_v17  ;;  %v1045_v16 = vmul.f32 %v1518_v36, %v1013_v58 }
 0x1fc   : > { %v1061_v31 = vmul.f32 %v1029_v23, %v2599_v29 }
 0x1fd   : > { %1108 = vst [vmem:[%s2287_s6 + $0xf0] sm:$0xff] %v1076_v51  ;;  %v1077_v42 = vmul.f32 %v1045_v16, %v2394_v13 }
 0x1fe   : > { %1093 = vst [vmem:[%s2287_s6 + $0x78] sm:$0xff] %v1061_v31 }
 0x1ff   : > { %1109 = vst [vmem:[%s2287_s6 + $0xf8] sm:$0xff] %v1077_v42 }
 0x200   : > { %1590 = shalt.err (!%p1587_p9)
}
 0x201   : > { %s1591_s27 = scalar_lea.hbm %s2450_s7, 4096  ;;  %s1595_s22 = scalar_lea.hbm %s2509_s4, 8192 }
 0x202   : > { %p1592_p1 = scmp.ne.s32.totalorder %s2450_s7, %s1591_s27  ;;  %p1596_p7 = scmp.lt.u32.totalorder %s2450_s7, %s2509_s4 }
 0x203   : > { %p1597_p13 = scmp.lt.u32.totalorder %s1595_s22, %s1591_s27  ;;  %p1599_p6 = scmp.lt.u32.totalorder %s1591_s27, %s2450_s7 }
 0x204   : > { %p1593_p2 = pnand %p1592_p1, %p1798_p10 }
 0x205   : > { %p1598_p4 = por %p1597_p13, %p1596_p7 }
 0x206   : > { %p1594_p3 = pneg %p1593_p2 }
 0x207   : > { %p1600_p8 = por %p1599_p6, %p1598_p4 }
 0x209   : > { %p1601_p12 = pnand %p1600_p8, %p1594_p3 }
 0x20b   : > { %1604 = shalt.err (!%p1601_p12)
}
 0x20c   : > { %s1672_s29 = smov 256   ;;  %s1673_s11 = smov 16  }
 0x20d   : > { %1378 = dma.vmem_to_hbm [thread:$0]  (%p1798_p10), %s2452_s9, 4096, %s2450_s7, %s1111_s18, %s1672_s29, %s1672_s29, %s1673_s11  }
 0x20e PF: > { %s1142_s13 = sand.u32 1, %s1643_s15   ;;  %p2600_p11 = scmp.ne.s32.totalorder %s2532_s26, 0 }
 0x20f   : > { %p2601_p0 = scmp.ge.s32.totalorder %s1663_s20, 2  ;;  %s1143_s24 = scalar_lea.sflag [#allocation4], %s1142_s13 }
 0x211   : > { %p1389_p5 = pnand %p2601_p0, %p2600_p11 }
 0x213   : > { %1638 = dma.done.wait (!%p1389_p5), %s1143_s24, 4096  }
 0x214   : > { %1640 = vsyncadd (!%p1389_p5), %s1143_s24, 4294963200  ;;  %s21_s20 = sadd.s32 1, %s1663_s20   ;;  %s2602_s15 = smov %s1647_s16 }
 0x215   : > { %p18_p9 = scmp.ge.s32.totalorder %s21_s20, 4   ;;  %s2603_s16 = smov %s1651_s17 }
 0x216   : > { %s2604_s17 = smov %s1807_s10  ;;  %s2605_s18 = smov %s1659_s19 }
 0x217   : > { %s2606_s19 = smov %s2608_s5  ;;  %20 = sbr.rel (!%p18_p9) target bundleno = 7 (0x7), region = 92 }
 0x21e   :  { %1148 = vsyncpa [#allocation3], 1 }
 0x21f   :  { %1150 = vsyncpa [#allocation3 + $0x1], 1 }
 0x220   :  { %1151 = vsyncpa [#allocation6], 1 }
 0x221   :  { %1152 = vsyncpa [#allocation4], 1 }
 0x222   :  { %1154 = vsyncpa [#allocation4 + $0x1], 1 }

</bundles_post_ra>
